<compile_context>
chip_gen: v7x
topology: tpu7x:2x2x1
jax: 0.10.0
libtpu: 0.0.40
codegen_flags: <defaults>
</compile_context>

<pallas_src>
import functools

import jax
import jax.numpy as jnp
from jax.experimental import pallas as pl
from jax.experimental.pallas import tpu as pltpu


# ----------------------------------------------------------------------------
# Model config helpers (match the PyTorch spec)
# ----------------------------------------------------------------------------
def _decide_num_classes(dataset):
    if dataset == 'cifar10' or dataset == 'svhn':
        return 10
    elif dataset == 'cifar100':
        return 100
    elif 'imagenet' in dataset:
        return 1000
    elif 'mnist' == dataset:
        return 10
    elif 'fmnist' == dataset:
        return 10
    elif 'femnist' == dataset:
        return 62
    else:
        raise NotImplementedError(f'this dataset ({dataset}) is not supported yet.')


def _round_up(x, m):
    return (x + m - 1) // m * m


# Real / padded widths (lane-dense where it matters)
C1 = 6            # conv1 real out channels
C1P = 128         # conv1 out channels padded for lane-dense matmul N
C1_IN2 = 8        # conv2 input channels after slicing back (6 -> 8)
C2 = 16           # conv2 real out channels
C2P = 128         # conv2 out channels padded
K1P = 128         # conv1 im2col K: 3*25 = 75  -> 128
K2P = 256         # conv2 im2col K: 8*25 = 200 -> 256
FC_K = 512        # fc1 K: 16*5*5 = 400 -> 512
FCP = 128         # fc1/fc2/classifier widths padded to 128


# ----------------------------------------------------------------------------
# Pallas kernels
# ----------------------------------------------------------------------------
def _conv_relu_pool_kernel(x00_ref, x01_ref, x10_ref, x11_ref, w_ref, b_ref,
                           o_ref, *, ipb):
    """Fused conv-matmul + bias + ReLU + 2x2 max-pool.

    Each x??_ref block is (ipb, R, Kp): im2col patches for one of the four pooling
    window positions, rows ordered (image, h2, w2).  o_ref block is (ipb, R, C).
    Pooling = elementwise max over the four dots (valid because ReLU and +bias are
    monotone), all in f32, then bias + ReLU epilogue and a bf16 cast.
    """
    w = w_ref[...]
    b = b_ref[...]                                      # (1, C) f32
    for i in range(ipb):                                # static, small unroll
        d = jnp.dot(x00_ref[i], w, preferred_element_type=jnp.float32)
        d = jnp.maximum(d, jnp.dot(x01_ref[i], w, preferred_element_type=jnp.float32))
        d = jnp.maximum(d, jnp.dot(x10_ref[i], w, preferred_element_type=jnp.float32))
        d = jnp.maximum(d, jnp.dot(x11_ref[i], w, preferred_element_type=jnp.float32))
        o_ref[i] = jnp.maximum(d + b, 0.0).astype(o_ref.dtype)


def _fc_chain_kernel(x_ref, w1_ref, b1_ref, w2_ref, b2_ref, w3_ref, b3_ref, o_ref):
    """Fused fc1(+relu) -> fc2(+relu) -> classifier; all weights resident in VMEM."""
    h = jnp.dot(x_ref[...], w1_ref[...], preferred_element_type=jnp.float32) + b1_ref[...]
    h = jnp.maximum(h, 0.0).astype(jnp.bfloat16)
    h = jnp.dot(h, w2_ref[...], preferred_element_type=jnp.float32) + b2_ref[...]
    h = jnp.maximum(h, 0.0).astype(jnp.bfloat16)
    out = jnp.dot(h, w3_ref[...], preferred_element_type=jnp.float32) + b3_ref[...]
    o_ref[...] = out.astype(o_ref.dtype)


# ----------------------------------------------------------------------------
# Pallas wrappers
# ----------------------------------------------------------------------------
def conv_relu_pool(pos_patches, w_mat, b_row, *, out_dtype=jnp.bfloat16):
    """pos_patches: 4 arrays (B, R, Kp) bf16 (one per pool position).
    w_mat: (Kp, C) bf16, b_row: (1, C) f32.  Returns pooled output (B, R, C) bf16."""
    B, R, Kp = pos_patches[0].shape
    Kw, C = w_mat.shape
    assert Kw == Kp and Kp % 128 == 0 and C % 128 == 0

    # Images per grid step: keep >= 2 parallel steps (v7x megacore), modest block size.
    ipb = 1
    for cand in (8, 4, 2):
        if B % cand == 0 and B // cand >= 2 and R * cand <= 2048:
            ipb = cand
            break
    gm = B // ipb

    cost = pl.CostEstimate(
        flops=2 * 4 * B * R * Kp * C,
        transcendentals=0,
        bytes_accessed=(4 * B * R * Kp * 2       # patches (bf16), read once
                        + gm * Kp * C * 2        # weight re-read per grid step
                        + B * R * C * 2          # pooled output (bf16)
                        + gm * C * 4),           # bias
    )

    return pl.pallas_call(
        functools.partial(_conv_relu_pool_kernel, ipb=ipb),
        out_shape=jax.ShapeDtypeStruct((B, R, C), out_dtype),
        grid=(gm,),
        in_specs=[pl.BlockSpec((ipb, R, Kp), lambda i: (i, 0, 0)) for _ in range(4)]
        + [
            pl.BlockSpec((Kp, C), lambda i: (0, 0)),
            pl.BlockSpec((1, C), lambda i: (0, 0)),
        ],
        out_specs=pl.BlockSpec((ipb, R, C), lambda i: (i, 0, 0)),
        compiler_params=pltpu.CompilerParams(
            dimension_semantics=("parallel",),
            vmem_limit_bytes=32 * 1024 * 1024,
        ),
        cost_estimate=cost,
    )(*pos_patches, w_mat, b_row)


def fc_chain(x, w1, b1, w2, b2, w3, b3):
    """Fused fc1+fc2+classifier.  x: (M, K1) bf16 with M a multiple of 16."""
    M, K1 = x.shape
    N1, N2, N3 = w1.shape[1], w2.shape[1], w3.shape[1]
    tm = 256 if (M > 512 and M % 256 == 0) else M
    gm = M // tm

    w_bytes = (K1 * N1 + N1 * N2 + N2 * N3) * 2
    cost = pl.CostEstimate(
        flops=2 * M * (K1 * N1 + N1 * N2 + N2 * N3),
        transcendentals=0,
        bytes_accessed=M * K1 * 2 + gm * w_bytes + M * N3 * 4 + gm * (N1 + N2 + N3) * 4,
    )

    return pl.pallas_call(
        _fc_chain_kernel,
        out_shape=jax.ShapeDtypeStruct((M, N3), jnp.float32),
        grid=(gm,),
        in_specs=[
            pl.BlockSpec((tm, K1), lambda i: (i, 0)),
            pl.BlockSpec((K1, N1), lambda i: (0, 0)),
            pl.BlockSpec((1, N1), lambda i: (0, 0)),
            pl.BlockSpec((N1, N2), lambda i: (0, 0)),
            pl.BlockSpec((1, N2), lambda i: (0, 0)),
            pl.BlockSpec((N2, N3), lambda i: (0, 0)),
            pl.BlockSpec((1, N3), lambda i: (0, 0)),
        ],
        out_specs=pl.BlockSpec((tm, N3), lambda i: (i, 0)),
        compiler_params=pltpu.CompilerParams(
            dimension_semantics=("parallel",),
            vmem_limit_bytes=32 * 1024 * 1024,
        ),
        cost_estimate=cost,
    )(x, w1, b1, w2, b2, w3, b3)


def _im2col_pool_positions(x, k, k_pad):
    """x: (B, H, W, C) -> 4 arrays (B, Hp*Wp, k_pad), one per 2x2 pooling-window
    position, rows ordered (image, h2, w2); patch flat order c*k*k + kh*k + kw
    (matches PyTorch conv weight .reshape(Cout, -1)).  XLA glue (one-time copy)."""
    B, H, W, C = x.shape
    Ho, Wo = H - k + 1, W - k + 1
    Hp, Wp = Ho // 2, Wo // 2          # floor, matches nn.MaxPool2d(2, 2)
    cols = [x[:, di:di + Ho, dj:dj + Wo, :] for di in range(k) for dj in range(k)]
    patches = jnp.stack(cols, axis=-1).reshape(B, Ho, Wo, C * k * k)
    K = C * k * k
    assert K <= k_pad
    if K < k_pad:
        patches = jnp.pad(patches, ((0, 0), (0, 0), (0, 0), (0, k_pad - K)))
    pos = []
    for ph in range(2):
        for pw in range(2):
            p = patches[:, ph:ph + 2 * Hp:2, pw:pw + 2 * Wp:2, :]
            pos.append(p.reshape(B, Hp * Wp, k_pad))
    return pos, (Hp, Wp)


# ----------------------------------------------------------------------------
# Model: parameters + forward
# ----------------------------------------------------------------------------
def init_params(key, num_classes):
    """Deterministic synthetic parameters in PyTorch layout for CNNCifar."""
    keys = jax.random.split(key, 10)

    def unif(k, shape, fan_in):
        bound = 1.0 / jnp.sqrt(jnp.float32(fan_in))
        return jax.random.uniform(k, shape, jnp.float32, -bound, bound)

    return {
        "conv1_w": unif(keys[0], (6, 3, 5, 5), 3 * 5 * 5),
        "conv1_b": unif(keys[1], (6,), 3 * 5 * 5),
        "conv2_w": unif(keys[2], (16, 6, 5, 5), 6 * 5 * 5),
        "conv2_b": unif(keys[3], (16,), 6 * 5 * 5),
        "fc1_w": unif(keys[4], (120, 16 * 5 * 5), 16 * 5 * 5),
        "fc1_b": unif(keys[5], (120,), 16 * 5 * 5),
        "fc2_w": unif(keys[6], (84, 120), 120),
        "fc2_b": unif(keys[7], (84,), 120),
        "cls_w": unif(keys[8], (num_classes, 84), 84),
        "cls_b": unif(keys[9], (num_classes,), 84),
    }


def prepare_params(p, num_classes):
    """One-time transpose / zero-pad / bf16-cast into kernel-ready layout."""
    # conv1: (6,3,5,5) -> (75,6) -> pad to (128,128)
    w1 = p["conv1_w"].reshape(6, 3 * 25).T
    w1 = jnp.pad(w1, ((0, K1P - 75), (0, C1P - C1))).astype(jnp.bfloat16)
    b1 = jnp.pad(p["conv1_b"], (0, C1P - C1)).reshape(1, C1P).astype(jnp.float32)

    # conv2: pad Cin 6->8 (matches the sliced/padded activation), K 200 -> 256
    w2 = jnp.pad(p["conv2_w"], ((0, 0), (0, C1_IN2 - C1), (0, 0), (0, 0)))   # (16,8,5,5)
    w2 = w2.reshape(C2, C1_IN2 * 25).T                                        # (200,16)
    w2 = jnp.pad(w2, ((0, K2P - C1_IN2 * 25), (0, C2P - C2))).astype(jnp.bfloat16)
    b2 = jnp.pad(p["conv2_b"], (0, C2P - C2)).reshape(1, C2P).astype(jnp.float32)

    # fc1: permute (c,h,w)-flat columns to NHWC-flat rows (h*5*16 + w*16 + c), pad K 400->512
    wf1 = p["fc1_w"].reshape(120, C2, 5, 5)
    wf1 = jnp.transpose(wf1, (2, 3, 1, 0)).reshape(5 * 5 * C2, 120)           # (400,120)
    wf1 = jnp.pad(wf1, ((0, FC_K - 5 * 5 * C2), (0, FCP - 120))).astype(jnp.bfloat16)
    bf1 = jnp.pad(p["fc1_b"], (0, FCP - 120)).reshape(1, FCP).astype(jnp.float32)

    wf2 = jnp.pad(p["fc2_w"].T, ((0, FCP - 120), (0, FCP - 84))).astype(jnp.bfloat16)
    bf2 = jnp.pad(p["fc2_b"], (0, FCP - 84)).reshape(1, FCP).astype(jnp.float32)

    wf3 = jnp.pad(p["cls_w"].T, ((0, FCP - 84), (0, FCP - num_classes))).astype(jnp.bfloat16)
    bf3 = jnp.pad(p["cls_b"], (0, FCP - num_classes)).reshape(1, FCP).astype(jnp.float32)

    return dict(conv1_w=w1, conv1_b=b1, conv2_w=w2, conv2_b=b2,
                fc1_w=wf1, fc1_b=bf1, fc2_w=wf2, fc2_b=bf2, cls_w=wf3, cls_b=bf3)


def cnn_cifar_forward(kp, x_nchw, num_classes):
    """x_nchw: (B, 3, 32, 32) float32 -> logits (B, num_classes) float32."""
    B = x_nchw.shape[0]
    x = jnp.transpose(x_nchw, (0, 2, 3, 1)).astype(jnp.bfloat16)   # NCHW -> NHWC

    # conv1 (3->6, k=5) + ReLU + 2x2 pool fused: 32 -> 28 -> 14
    pos1, (hp1, wp1) = _im2col_pool_positions(x, 5, K1P)
    y1 = conv_relu_pool(pos1, kp["conv1_w"], kp["conv1_b"])         # (B, 196, 128) bf16

    # slice padded channels back to the 6 real ones (pad to 8) before conv2's im2col,
    # so conv2's reduction dim is 200->256 instead of 3200
    x2 = y1.reshape(B, hp1, wp1, C1P)[..., :C1]
    x2 = jnp.pad(x2, ((0, 0), (0, 0), (0, 0), (0, C1_IN2 - C1)))

    # conv2 (6->16, k=5) + ReLU + 2x2 pool fused: 14 -> 10 -> 5
    pos2, (hp2, wp2) = _im2col_pool_positions(x2, 5, K2P)
    y2 = conv_relu_pool(pos2, kp["conv2_w"], kp["conv2_b"])         # (B, 25, 128) bf16
    assert hp2 == 5 and wp2 == 5, "CNNCifar fc1 expects a 16x5x5 feature map (32x32 input)"

    # NHWC-flat features, real channels only (fc1 weight permuted at init to match)
    feats = y2.reshape(B, hp2, wp2, C2P)[..., :C2].reshape(B, hp2 * wp2 * C2)   # (B, 400)
    m_pad = max(16, _round_up(B, 16))
    feats = jnp.pad(feats, ((0, m_pad - B), (0, FC_K - feats.shape[1])))        # (m_pad, 512)

    logits = fc_chain(feats, kp["fc1_w"], kp["fc1_b"],
                      kp["fc2_w"], kp["fc2_b"],
                      kp["cls_w"], kp["cls_b"])
    return logits[:B, :num_classes]


if __name__ == "__main__":
    dataset = "cifar10"
    num_classes = _decide_num_classes(dataset)

    key = jax.random.PRNGKey(0)
    k_param, k_input = jax.random.split(key)

    params = init_params(k_param, num_classes)
    kparams = prepare_params(params, num_classes)

    # CIFAR-shaped input (NCHW, like PyTorch); small batch = 2.
    x = jax.random.normal(k_input, (2, 3, 32, 32), dtype=jnp.float32)

    fwd = jax.jit(functools.partial(cnn_cifar_forward, num_classes=num_classes))
    logits = jax.block_until_ready(fwd(kparams, x))

    assert logits.shape == (2, num_classes), logits.shape
    assert logits.dtype == jnp.float32
    assert bool(jnp.all(jnp.isfinite(logits)))
    print("KERNEL_OK")
</pallas_src>

<mosaic_0001>
module attributes {stable_mosaic.version = 11 : i64} {
  func.func @_conv_relu_pool_kernel(%arg0: i32, %arg1: memref<1x196x128xbf16, #tpu.memory_space<vmem>>, %arg2: memref<1x196x128xbf16, #tpu.memory_space<vmem>>, %arg3: memref<1x196x128xbf16, #tpu.memory_space<vmem>>, %arg4: memref<1x196x128xbf16, #tpu.memory_space<vmem>>, %arg5: memref<128x128xbf16, #tpu.memory_space<vmem>>, %arg6: memref<1x128xf32, #tpu.memory_space<vmem>>, %arg7: memref<1x196x128xbf16, #tpu.memory_space<vmem>>) attributes {dimension_semantics = [#tpu.dimension_semantics<parallel>], iteration_bounds = array<i64: 2>, scalar_prefetch = 0 : i64, scratch_operands = 0 : i64, tpu.core_type = #tpu.core_type<tc>, window_params = [{transform_indices = @transform_0, window_bounds = array<i64: 1, 196, 128>}, {transform_indices = @transform_1, window_bounds = array<i64: 1, 196, 128>}, {transform_indices = @transform_2, window_bounds = array<i64: 1, 196, 128>}, {transform_indices = @transform_3, window_bounds = array<i64: 1, 196, 128>}, {pipeline_mode = #tpu.pipeline_mode<synchronous>, transform_indices = @transform_4, window_bounds = array<i64: 128, 128>}, {pipeline_mode = #tpu.pipeline_mode<synchronous>, transform_indices = @transform_5, window_bounds = array<i64: 1, 128>}, {transform_indices = @transform_6, window_bounds = array<i64: 1, 196, 128>}]} {
    %c0 = arith.constant 0 : index
    %c0_0 = arith.constant 0 : index
    %0 = vector.load %arg5[%c0, %c0_0] : memref<128x128xbf16, #tpu.memory_space<vmem>>, vector<128x128xbf16>
    %c0_1 = arith.constant 0 : index
    %c0_2 = arith.constant 0 : index
    %1 = vector.load %arg6[%c0_1, %c0_2] : memref<1x128xf32, #tpu.memory_space<vmem>>, vector<1x128xf32>
    %c0_3 = arith.constant 0 : index
    %c0_4 = arith.constant 0 : index
    %c0_5 = arith.constant 0 : index
    %2 = vector.load %arg1[%c0_3, %c0_4, %c0_5] : memref<1x196x128xbf16, #tpu.memory_space<vmem>>, vector<1x196x128xbf16>
    %3 = vector.shape_cast %2 : vector<1x196x128xbf16> to vector<196x128xbf16>
    %cst = arith.constant dense<0.000000e+00> : vector<196x128xf32>
    %4 = tpu.matmul %3, %0, %cst {dimension_numbers = #tpu.dot_dimension_numbers<[1], [0], [0], [1], [0, 0, 1, 1], [], []>} : vector<196x128xbf16>, vector<128x128xbf16>, vector<196x128xf32> -> vector<196x128xf32>
    %c0_6 = arith.constant 0 : index
    %c0_7 = arith.constant 0 : index
    %c0_8 = arith.constant 0 : index
    %5 = vector.load %arg2[%c0_6, %c0_7, %c0_8] : memref<1x196x128xbf16, #tpu.memory_space<vmem>>, vector<1x196x128xbf16>
    %6 = vector.shape_cast %5 : vector<1x196x128xbf16> to vector<196x128xbf16>
    %cst_9 = arith.constant dense<0.000000e+00> : vector<196x128xf32>
    %7 = tpu.matmul %6, %0, %cst_9 {dimension_numbers = #tpu.dot_dimension_numbers<[1], [0], [0], [1], [0, 0, 1, 1], [], []>} : vector<196x128xbf16>, vector<128x128xbf16>, vector<196x128xf32> -> vector<196x128xf32>
    %8 = arith.maximumf %4, %7 : vector<196x128xf32>
    %c0_10 = arith.constant 0 : index
    %c0_11 = arith.constant 0 : index
    %c0_12 = arith.constant 0 : index
    %9 = vector.load %arg3[%c0_10, %c0_11, %c0_12] : memref<1x196x128xbf16, #tpu.memory_space<vmem>>, vector<1x196x128xbf16>
    %10 = vector.shape_cast %9 : vector<1x196x128xbf16> to vector<196x128xbf16>
    %cst_13 = arith.constant dense<0.000000e+00> : vector<196x128xf32>
    %11 = tpu.matmul %10, %0, %cst_13 {dimension_numbers = #tpu.dot_dimension_numbers<[1], [0], [0], [1], [0, 0, 1, 1], [], []>} : vector<196x128xbf16>, vector<128x128xbf16>, vector<196x128xf32> -> vector<196x128xf32>
    %12 = arith.maximumf %8, %11 : vector<196x128xf32>
    %c0_14 = arith.constant 0 : index
    %c0_15 = arith.constant 0 : index
    %c0_16 = arith.constant 0 : index
    %13 = vector.load %arg4[%c0_14, %c0_15, %c0_16] : memref<1x196x128xbf16, #tpu.memory_space<vmem>>, vector<1x196x128xbf16>
    %14 = vector.shape_cast %13 : vector<1x196x128xbf16> to vector<196x128xbf16>
    %cst_17 = arith.constant dense<0.000000e+00> : vector<196x128xf32>
    %15 = tpu.matmul %14, %0, %cst_17 {dimension_numbers = #tpu.dot_dimension_numbers<[1], [0], [0], [1], [0, 0, 1, 1], [], []>} : vector<196x128xbf16>, vector<128x128xbf16>, vector<196x128xf32> -> vector<196x128xf32>
    %16 = arith.maximumf %12, %15 : vector<196x128xf32>
    %17 = vector.broadcast %1 : vector<1x128xf32> to vector<196x128xf32>
    %18 = arith.addf %16, %17 : vector<196x128xf32>
    %cst_18 = arith.constant 0.000000e+00 : f32
    %19 = vector.broadcast %cst_18 : f32 to vector<196x128xf32>
    %20 = arith.maximumf %18, %19 : vector<196x128xf32>
    %21 = arith.truncf %20 : vector<196x128xf32> to vector<196x128xbf16>
    %c0_19 = arith.constant 0 : index
    %c0_20 = arith.constant 0 : index
    %c0_21 = arith.constant 0 : index
    %22 = vector.load %arg7[%c0_19, %c0_20, %c0_21] : memref<1x196x128xbf16, #tpu.memory_space<vmem>>, vector<1x196x128xbf16>
    %23 = vector.shape_cast %22 : vector<1x196x128xbf16> to vector<196x128xbf16>
    %24 = vector.shape_cast %21 : vector<196x128xbf16> to vector<1x196x128xbf16>
    tpu.vector_store %arg7[%c0_19, %c0_20, %c0_21], %24 {strides = array<i32>} : memref<1x196x128xbf16, #tpu.memory_space<vmem>>, vector<1x196x128xbf16>,
    return
  }
  func.func @transform_0(%arg0: i32) -> (i32, i32, i32) {
    %c0_i32 = arith.constant 0 : i32
    %c0_i32_0 = arith.constant 0 : i32
    %c0_i32_1 = arith.constant 0 : i32
    return %arg0, %c0_i32, %c0_i32_0 : i32, i32, i32
  }
  func.func @transform_1(%arg0: i32) -> (i32, i32, i32) {
    %c0_i32 = arith.constant 0 : i32
    %c0_i32_0 = arith.constant 0 : i32
    %c0_i32_1 = arith.constant 0 : i32
    return %arg0, %c0_i32, %c0_i32_0 : i32, i32, i32
  }
  func.func @transform_2(%arg0: i32) -> (i32, i32, i32) {
    %c0_i32 = arith.constant 0 : i32
    %c0_i32_0 = arith.constant 0 : i32
    %c0_i32_1 = arith.constant 0 : i32
    return %arg0, %c0_i32, %c0_i32_0 : i32, i32, i32
  }
  func.func @transform_3(%arg0: i32) -> (i32, i32, i32) {
    %c0_i32 = arith.constant 0 : i32
    %c0_i32_0 = arith.constant 0 : i32
    %c0_i32_1 = arith.constant 0 : i32
    return %arg0, %c0_i32, %c0_i32_0 : i32, i32, i32
  }
  func.func @transform_4(%arg0: i32) -> (i32, i32) {
    %c0_i32 = arith.constant 0 : i32
    %c0_i32_0 = arith.constant 0 : i32
    %c0_i32_1 = arith.constant 0 : i32
    return %c0_i32, %c0_i32_0 : i32, i32
  }
  func.func @transform_5(%arg0: i32) -> (i32, i32) {
    %c0_i32 = arith.constant 0 : i32
    %c0_i32_0 = arith.constant 0 : i32
    %c0_i32_1 = arith.constant 0 : i32
    return %c0_i32, %c0_i32_0 : i32, i32
  }
  func.func @transform_6(%arg0: i32) -> (i32, i32, i32) {
    %c0_i32 = arith.constant 0 : i32
    %c0_i32_0 = arith.constant 0 : i32
    %c0_i32_1 = arith.constant 0 : i32
    return %arg0, %c0_i32, %c0_i32_0 : i32, i32, i32
  }
}

module attributes {stable_mosaic.version = 11 : i64} {
  func.func @_conv_relu_pool_kernel(%arg0: i32, %arg1: memref<1x25x256xbf16, #tpu.memory_space<vmem>>, %arg2: memref<1x25x256xbf16, #tpu.memory_space<vmem>>, %arg3: memref<1x25x256xbf16, #tpu.memory_space<vmem>>, %arg4: memref<1x25x256xbf16, #tpu.memory_space<vmem>>, %arg5: memref<256x128xbf16, #tpu.memory_space<vmem>>, %arg6: memref<1x128xf32, #tpu.memory_space<vmem>>, %arg7: memref<1x25x128xbf16, #tpu.memory_space<vmem>>) attributes {dimension_semantics = [#tpu.dimension_semantics<parallel>], iteration_bounds = array<i64: 2>, scalar_prefetch = 0 : i64, scratch_operands = 0 : i64, tpu.core_type = #tpu.core_type<tc>, window_params = [{transform_indices = @transform_0, window_bounds = array<i64: 1, 25, 256>}, {transform_indices = @transform_1, window_bounds = array<i64: 1, 25, 256>}, {transform_indices = @transform_2, window_bounds = array<i64: 1, 25, 256>}, {transform_indices = @transform_3, window_bounds = array<i64: 1, 25, 256>}, {pipeline_mode = #tpu.pipeline_mode<synchronous>, transform_indices = @transform_4, window_bounds = array<i64: 256, 128>}, {pipeline_mode = #tpu.pipeline_mode<synchronous>, transform_indices = @transform_5, window_bounds = array<i64: 1, 128>}, {transform_indices = @transform_6, window_bounds = array<i64: 1, 25, 128>}]} {
    %c0 = arith.constant 0 : index
    %c0_0 = arith.constant 0 : index
    %0 = vector.load %arg5[%c0, %c0_0] : memref<256x128xbf16, #tpu.memory_space<vmem>>, vector<256x128xbf16>
    %c0_1 = arith.constant 0 : index
    %c0_2 = arith.constant 0 : index
    %1 = vector.load %arg6[%c0_1, %c0_2] : memref<1x128xf32, #tpu.memory_space<vmem>>, vector<1x128xf32>
    %c0_3 = arith.constant 0 : index
    %c0_4 = arith.constant 0 : index
    %c0_5 = arith.constant 0 : index
    %2 = vector.load %arg1[%c0_3, %c0_4, %c0_5] : memref<1x25x256xbf16, #tpu.memory_space<vmem>>, vector<1x25x256xbf16>
    %3 = vector.shape_cast %2 : vector<1x25x256xbf16> to vector<25x256xbf16>
    %cst = arith.constant dense<0.000000e+00> : vector<25x128xf32>
    %4 = tpu.matmul %3, %0, %cst {dimension_numbers = #tpu.dot_dimension_numbers<[1], [0], [0], [1], [0, 0, 1, 1], [], []>} : vector<25x256xbf16>, vector<256x128xbf16>, vector<25x128xf32> -> vector<25x128xf32>
    %c0_6 = arith.constant 0 : index
    %c0_7 = arith.constant 0 : index
    %c0_8 = arith.constant 0 : index
    %5 = vector.load %arg2[%c0_6, %c0_7, %c0_8] : memref<1x25x256xbf16, #tpu.memory_space<vmem>>, vector<1x25x256xbf16>
    %6 = vector.shape_cast %5 : vector<1x25x256xbf16> to vector<25x256xbf16>
    %cst_9 = arith.constant dense<0.000000e+00> : vector<25x128xf32>
    %7 = tpu.matmul %6, %0, %cst_9 {dimension_numbers = #tpu.dot_dimension_numbers<[1], [0], [0], [1], [0, 0, 1, 1], [], []>} : vector<25x256xbf16>, vector<256x128xbf16>, vector<25x128xf32> -> vector<25x128xf32>
    %8 = arith.maximumf %4, %7 : vector<25x128xf32>
    %c0_10 = arith.constant 0 : index
    %c0_11 = arith.constant 0 : index
    %c0_12 = arith.constant 0 : index
    %9 = vector.load %arg3[%c0_10, %c0_11, %c0_12] : memref<1x25x256xbf16, #tpu.memory_space<vmem>>, vector<1x25x256xbf16>
    %10 = vector.shape_cast %9 : vector<1x25x256xbf16> to vector<25x256xbf16>
    %cst_13 = arith.constant dense<0.000000e+00> : vector<25x128xf32>
    %11 = tpu.matmul %10, %0, %cst_13 {dimension_numbers = #tpu.dot_dimension_numbers<[1], [0], [0], [1], [0, 0, 1, 1], [], []>} : vector<25x256xbf16>, vector<256x128xbf16>, vector<25x128xf32> -> vector<25x128xf32>
    %12 = arith.maximumf %8, %11 : vector<25x128xf32>
    %c0_14 = arith.constant 0 : index
    %c0_15 = arith.constant 0 : index
    %c0_16 = arith.constant 0 : index
    %13 = vector.load %arg4[%c0_14, %c0_15, %c0_16] : memref<1x25x256xbf16, #tpu.memory_space<vmem>>, vector<1x25x256xbf16>
    %14 = vector.shape_cast %13 : vector<1x25x256xbf16> to vector<25x256xbf16>
    %cst_17 = arith.constant dense<0.000000e+00> : vector<25x128xf32>
    %15 = tpu.matmul %14, %0, %cst_17 {dimension_numbers = #tpu.dot_dimension_numbers<[1], [0], [0], [1], [0, 0, 1, 1], [], []>} : vector<25x256xbf16>, vector<256x128xbf16>, vector<25x128xf32> -> vector<25x128xf32>
    %16 = arith.maximumf %12, %15 : vector<25x128xf32>
    %17 = vector.broadcast %1 : vector<1x128xf32> to vector<25x128xf32>
    %18 = arith.addf %16, %17 : vector<25x128xf32>
    %cst_18 = arith.constant 0.000000e+00 : f32
    %19 = vector.broadcast %cst_18 : f32 to vector<25x128xf32>
    %20 = arith.maximumf %18, %19 : vector<25x128xf32>
    %21 = arith.truncf %20 : vector<25x128xf32> to vector<25x128xbf16>
    %c0_19 = arith.constant 0 : index
    %c0_20 = arith.constant 0 : index
    %c0_21 = arith.constant 0 : index
    %22 = vector.load %arg7[%c0_19, %c0_20, %c0_21] : memref<1x25x128xbf16, #tpu.memory_space<vmem>>, vector<1x25x128xbf16>
    %23 = vector.shape_cast %22 : vector<1x25x128xbf16> to vector<25x128xbf16>
    %24 = vector.shape_cast %21 : vector<25x128xbf16> to vector<1x25x128xbf16>
    tpu.vector_store %arg7[%c0_19, %c0_20, %c0_21], %24 {strides = array<i32>} : memref<1x25x128xbf16, #tpu.memory_space<vmem>>, vector<1x25x128xbf16>,
    return
  }
  func.func @transform_0(%arg0: i32) -> (i32, i32, i32) {
    %c0_i32 = arith.constant 0 : i32
    %c0_i32_0 = arith.constant 0 : i32
    %c0_i32_1 = arith.constant 0 : i32
    return %arg0, %c0_i32, %c0_i32_0 : i32, i32, i32
  }
  func.func @transform_1(%arg0: i32) -> (i32, i32, i32) {
    %c0_i32 = arith.constant 0 : i32
    %c0_i32_0 = arith.constant 0 : i32
    %c0_i32_1 = arith.constant 0 : i32
    return %arg0, %c0_i32, %c0_i32_0 : i32, i32, i32
  }
  func.func @transform_2(%arg0: i32) -> (i32, i32, i32) {
    %c0_i32 = arith.constant 0 : i32
    %c0_i32_0 = arith.constant 0 : i32
    %c0_i32_1 = arith.constant 0 : i32
    return %arg0, %c0_i32, %c0_i32_0 : i32, i32, i32
  }
  func.func @transform_3(%arg0: i32) -> (i32, i32, i32) {
    %c0_i32 = arith.constant 0 : i32
    %c0_i32_0 = arith.constant 0 : i32
    %c0_i32_1 = arith.constant 0 : i32
    return %arg0, %c0_i32, %c0_i32_0 : i32, i32, i32
  }
  func.func @transform_4(%arg0: i32) -> (i32, i32) {
    %c0_i32 = arith.constant 0 : i32
    %c0_i32_0 = arith.constant 0 : i32
    %c0_i32_1 = arith.constant 0 : i32
    return %c0_i32, %c0_i32_0 : i32, i32
  }
  func.func @transform_5(%arg0: i32) -> (i32, i32) {
    %c0_i32 = arith.constant 0 : i32
    %c0_i32_0 = arith.constant 0 : i32
    %c0_i32_1 = arith.constant 0 : i32
    return %c0_i32, %c0_i32_0 : i32, i32
  }
  func.func @transform_6(%arg0: i32) -> (i32, i32, i32) {
    %c0_i32 = arith.constant 0 : i32
    %c0_i32_0 = arith.constant 0 : i32
    %c0_i32_1 = arith.constant 0 : i32
    return %arg0, %c0_i32, %c0_i32_0 : i32, i32, i32
  }
}

module attributes {stable_mosaic.version = 11 : i64} {
  func.func @_fc_chain_kernel(%arg0: i32, %arg1: memref<16x512xbf16, #tpu.memory_space<vmem>>, %arg2: memref<512x128xbf16, #tpu.memory_space<vmem>>, %arg3: memref<1x128xf32, #tpu.memory_space<vmem>>, %arg4: memref<128x128xbf16, #tpu.memory_space<vmem>>, %arg5: memref<1x128xf32, #tpu.memory_space<vmem>>, %arg6: memref<128x128xbf16, #tpu.memory_space<vmem>>, %arg7: memref<1x128xf32, #tpu.memory_space<vmem>>, %arg8: memref<16x128xf32, #tpu.memory_space<vmem>>) attributes {dimension_semantics = [#tpu.dimension_semantics<parallel>], iteration_bounds = array<i64: 1>, scalar_prefetch = 0 : i64, scratch_operands = 0 : i64, tpu.core_type = #tpu.core_type<tc>, window_params = [{transform_indices = @transform_0, window_bounds = array<i64: 16, 512>}, {pipeline_mode = #tpu.pipeline_mode<synchronous>, transform_indices = @transform_1, window_bounds = array<i64: 512, 128>}, {pipeline_mode = #tpu.pipeline_mode<synchronous>, transform_indices = @transform_2, window_bounds = array<i64: 1, 128>}, {pipeline_mode = #tpu.pipeline_mode<synchronous>, transform_indices = @transform_3, window_bounds = array<i64: 128, 128>}, {pipeline_mode = #tpu.pipeline_mode<synchronous>, transform_indices = @transform_4, window_bounds = array<i64: 1, 128>}, {pipeline_mode = #tpu.pipeline_mode<synchronous>, transform_indices = @transform_5, window_bounds = array<i64: 128, 128>}, {pipeline_mode = #tpu.pipeline_mode<synchronous>, transform_indices = @transform_6, window_bounds = array<i64: 1, 128>}, {transform_indices = @transform_7, window_bounds = array<i64: 16, 128>}]} {
    %c0 = arith.constant 0 : index
    %c0_0 = arith.constant 0 : index
    %0 = vector.load %arg1[%c0, %c0_0] : memref<16x512xbf16, #tpu.memory_space<vmem>>, vector<16x512xbf16>
    %c0_1 = arith.constant 0 : index
    %c0_2 = arith.constant 0 : index
    %1 = vector.load %arg2[%c0_1, %c0_2] : memref<512x128xbf16, #tpu.memory_space<vmem>>, vector<512x128xbf16>
    %cst = arith.constant dense<0.000000e+00> : vector<16x128xf32>
    %2 = tpu.matmul %0, %1, %cst {dimension_numbers = #tpu.dot_dimension_numbers<[1], [0], [0], [1], [0, 0, 1, 1], [], []>} : vector<16x512xbf16>, vector<512x128xbf16>, vector<16x128xf32> -> vector<16x128xf32>
    %c0_3 = arith.constant 0 : index
    %c0_4 = arith.constant 0 : index
    %3 = vector.load %arg3[%c0_3, %c0_4] : memref<1x128xf32, #tpu.memory_space<vmem>>, vector<1x128xf32>
    %4 = vector.broadcast %3 : vector<1x128xf32> to vector<16x128xf32>
    %5 = arith.addf %2, %4 : vector<16x128xf32>
    %cst_5 = arith.constant 0.000000e+00 : f32
    %6 = vector.broadcast %cst_5 : f32 to vector<16x128xf32>
    %7 = arith.maximumf %5, %6 : vector<16x128xf32>
    %8 = arith.truncf %7 : vector<16x128xf32> to vector<16x128xbf16>
    %c0_6 = arith.constant 0 : index
    %c0_7 = arith.constant 0 : index
    %9 = vector.load %arg4[%c0_6, %c0_7] : memref<128x128xbf16, #tpu.memory_space<vmem>>, vector<128x128xbf16>
    %cst_8 = arith.constant dense<0.000000e+00> : vector<16x128xf32>
    %10 = tpu.matmul %8, %9, %cst_8 {dimension_numbers = #tpu.dot_dimension_numbers<[1], [0], [0], [1], [0, 0, 1, 1], [], []>} : vector<16x128xbf16>, vector<128x128xbf16>, vector<16x128xf32> -> vector<16x128xf32>
    %c0_9 = arith.constant 0 : index
    %c0_10 = arith.constant 0 : index
    %11 = vector.load %arg5[%c0_9, %c0_10] : memref<1x128xf32, #tpu.memory_space<vmem>>, vector<1x128xf32>
    %12 = vector.broadcast %11 : vector<1x128xf32> to vector<16x128xf32>
    %13 = arith.addf %10, %12 : vector<16x128xf32>
    %cst_11 = arith.constant 0.000000e+00 : f32
    %14 = vector.broadcast %cst_11 : f32 to vector<16x128xf32>
    %15 = arith.maximumf %13, %14 : vector<16x128xf32>
    %16 = arith.truncf %15 : vector<16x128xf32> to vector<16x128xbf16>
    %c0_12 = arith.constant 0 : index
    %c0_13 = arith.constant 0 : index
    %17 = vector.load %arg6[%c0_12, %c0_13] : memref<128x128xbf16, #tpu.memory_space<vmem>>, vector<128x128xbf16>
    %cst_14 = arith.constant dense<0.000000e+00> : vector<16x128xf32>
    %18 = tpu.matmul %16, %17, %cst_14 {dimension_numbers = #tpu.dot_dimension_numbers<[1], [0], [0], [1], [0, 0, 1, 1], [], []>} : vector<16x128xbf16>, vector<128x128xbf16>, vector<16x128xf32> -> vector<16x128xf32>
    %c0_15 = arith.constant 0 : index
    %c0_16 = arith.constant 0 : index
    %19 = vector.load %arg7[%c0_15, %c0_16] : memref<1x128xf32, #tpu.memory_space<vmem>>, vector<1x128xf32>
    %20 = vector.broadcast %19 : vector<1x128xf32> to vector<16x128xf32>
    %21 = arith.addf %18, %20 : vector<16x128xf32>
    %c0_17 = arith.constant 0 : index
    %c0_18 = arith.constant 0 : index
    %22 = vector.load %arg8[%c0_17, %c0_18] : memref<16x128xf32, #tpu.memory_space<vmem>>, vector<16x128xf32>
    tpu.vector_store %arg8[%c0_17, %c0_18], %21 {strides = array<i32>} : memref<16x128xf32, #tpu.memory_space<vmem>>, vector<16x128xf32>,
    return
  }
  func.func @transform_0(%arg0: i32) -> (i32, i32) {
    %c0_i32 = arith.constant 0 : i32
    %c0_i32_0 = arith.constant 0 : i32
    return %arg0, %c0_i32 : i32, i32
  }
  func.func @transform_1(%arg0: i32) -> (i32, i32) {
    %c0_i32 = arith.constant 0 : i32
    %c0_i32_0 = arith.constant 0 : i32
    %c0_i32_1 = arith.constant 0 : i32
    return %c0_i32, %c0_i32_0 : i32, i32
  }
  func.func @transform_2(%arg0: i32) -> (i32, i32) {
    %c0_i32 = arith.constant 0 : i32
    %c0_i32_0 = arith.constant 0 : i32
    %c0_i32_1 = arith.constant 0 : i32
    return %c0_i32, %c0_i32_0 : i32, i32
  }
  func.func @transform_3(%arg0: i32) -> (i32, i32) {
    %c0_i32 = arith.constant 0 : i32
    %c0_i32_0 = arith.constant 0 : i32
    %c0_i32_1 = arith.constant 0 : i32
    return %c0_i32, %c0_i32_0 : i32, i32
  }
  func.func @transform_4(%arg0: i32) -> (i32, i32) {
    %c0_i32 = arith.constant 0 : i32
    %c0_i32_0 = arith.constant 0 : i32
    %c0_i32_1 = arith.constant 0 : i32
    return %c0_i32, %c0_i32_0 : i32, i32
  }
  func.func @transform_5(%arg0: i32) -> (i32, i32) {
    %c0_i32 = arith.constant 0 : i32
    %c0_i32_0 = arith.constant 0 : i32
    %c0_i32_1 = arith.constant 0 : i32
    return %c0_i32, %c0_i32_0 : i32, i32
  }
  func.func @transform_6(%arg0: i32) -> (i32, i32) {
    %c0_i32 = arith.constant 0 : i32
    %c0_i32_0 = arith.constant 0 : i32
    %c0_i32_1 = arith.constant 0 : i32
    return %c0_i32, %c0_i32_0 : i32, i32
  }
  func.func @transform_7(%arg0: i32) -> (i32, i32) {
    %c0_i32 = arith.constant 0 : i32
    %c0_i32_0 = arith.constant 0 : i32
    return %arg0, %c0_i32 : i32, i32
  }
}

</mosaic_0001>

<bundles_post_ra>
// kernel: cnn_cifar_forward.3
= control target key start
LH: loop header
LB: loop body
LE: loop exit
PB: predicated region body
PF: predicated region fallthrough
CT: control target
= control target key end

     0   :  { %s2340_s21 = smov 0   ;;  %s2869_s0 = inlined_call_operand.vmem [shape: bf16[2,196,128], index: 0, kind: input, shape index: {}]   ;;  %s2870_s1 = inlined_call_operand.vmem [shape: bf16[2,196,128], index: 1, kind: input, shape index: {}]   ;;  %s2871_s2 = inlined_call_operand.vmem [shape: bf16[2,196,128], index: 2, kind: input, shape index: {}]   ;;  %s2872_s3 = inlined_call_operand.vmem [shape: bf16[2,196,128], index: 3, kind: input, shape index: {}]   ;;  %s2873_s4 = inlined_call_operand.vmem [shape: bf16[128,128], index: 4, kind: input, shape index: {}]   ;;  %s2874_s5 = inlined_call_operand.vmem [shape: f32[1,128], index: 5, kind: input, shape index: {}]   ;;  %s2875_s6 = inlined_call_operand.vmem [shape: bf16[2,196,128], index: 6, kind: output, shape index: {}]  }
   0x1 LB: > { %s1674_s22 = sadd.s32 4294967295, %s2301_s21   ;;  %p1678_p0 = scmp.ge.s32.totalorder %s2301_s21, 1  ;;  %s2301_s21 = sphi %s2340_s21, %s16_s21  }
   0x2   : > { %p242_p1 = scmp.lt.s32.totalorder %s2301_s21, 3 }
   0x4   : > { %p243_p2 = pnand %p1678_p0, %p242_p1 }
   0x6   : > { %246 = sbr.rel (%p243_p2) target bundleno = 469 (0x1d5), region = 44 }
   0xd   : > { %v2235_v0 = vld [vmem:[%s2873_s4] sm:$0xff]   ;;  %v2303_v1 = vmov 0.0   ;;  %v2236_v2 = vld [vmem:[%s2873_s4 + $0x8] sm:$0xff]   ;;  %p287_p3 = scmp.lt.s32.totalorder %s1674_s22, 1  ;;  %vm2304_vm0 = vmmov 0   ;;  %v2237_v3 = vld [vmem:[%s2873_s4 + $0x10] sm:$0xff]  }
   0xe   : > { %1952 = vmatprep.subr.bf16.mxu0 %v2303_v1  ;;  %2020 = vmatprep.subr.bf16.mxu1 %v2303_v1  ;;  %v2238_v4 = vld [vmem:[%s2873_s4 + $0x18] sm:$0xff]   ;;  %v2239_v5 = vld [vmem:[%s2873_s4 + $0x20] sm:$0xff]   ;;  %v2240_v6 = vld [vmem:[%s2873_s4 + $0x28] sm:$0xff]  }
   0xf   : > { %1953 = vmatpush3.bf16.msra.mxu0 %v2235_v0  ;;  %2021 = vmatpush3.bf16.msra.mxu1 %v2235_v0  ;;  %s2910_s22 = smov (!%p287_p3, %s1674_s22), 1  ;;  %v2241_v7 = vld [vmem:[%s2873_s4 + $0x30] sm:$0xff]   ;;  %v2404_v8 = vld [vmem:[%s2873_s4 + $0x38] sm:$0xff]  }
  0x10   : > { %1954 = vmatprep.subr.bf16.mxu0 %v2303_v1  ;;  %2022 = vmatprep.subr.bf16.mxu1 %v2303_v1  ;;  %s2365_s29 = smul.u32 100, %s2910_s22 }
  0x11   : > { %1968 = vmatprep.mubr.msk.bf16.mxu0 %vm2304_vm0, %v2303_v1  ;;  %2036 = vmatprep.mubr.msk.bf16.mxu1 %vm2304_vm0, %v2303_v1 }
  0x12   : > { %s2373_s8 = scalar_lea.vmem %s2869_s0, %s2365_s29  ;;  %s2379_s11 = scalar_lea.vmem %s2870_s1, %s2365_s29 }
  0x13   : > { %1955 = vmatpush3.bf16.msra.mxu0 %v2236_v2  ;;  %2023 = vmatpush3.bf16.msra.mxu1 %v2236_v2  ;;  %v2243_v9 = vld [vmem:[%s2373_s8] sm:$0xff]   ;;  %s2418_s25 = scalar_lea.vmem %s2871_s2, %s2365_s29  ;;  %s2424_s28 = scalar_lea.vmem %s2872_s3, %s2365_s29  ;;  %v2245_v11 = vld [vmem:[%s2373_s8 + $0x8] sm:$0xff]   ;;  %v2247_v13 = vld [vmem:[%s2373_s8 + $0x10] sm:$0xff]  }
  0x14   : > { %1956 = vmatprep.subr.bf16.mxu0 %v2303_v1  ;;  %2024 = vmatprep.subr.bf16.mxu1 %v2303_v1  ;;  %v2244_v10 = vld [vmem:[%s2379_s11] sm:$0xff]   ;;  %v2246_v12 = vld [vmem:[%s2379_s11 + $0x8] sm:$0xff]   ;;  %v2248_v14 = vld [vmem:[%s2379_s11 + $0x10] sm:$0xff]   ;;  %s2762_s10 = scalar_lea.vmem %s2875_s6, %s2365_s29 }
  0x15   : > { %v2249_v15 = vld [vmem:[%s2373_s8 + $0x18] sm:$0xff]   ;;  %v2251_v17 = vld [vmem:[%s2373_s8 + $0x20] sm:$0xff]   ;;  %v2253_v19 = vld [vmem:[%s2373_s8 + $0x28] sm:$0xff]  }
  0x16   : > { %v2250_v16 = vld [vmem:[%s2379_s11 + $0x18] sm:$0xff]   ;;  %v2252_v18 = vld [vmem:[%s2379_s11 + $0x20] sm:$0xff]   ;;  %v2254_v20 = vld [vmem:[%s2379_s11 + $0x28] sm:$0xff]  }
  0x17   : > { %1957 = vmatpush3.bf16.msra.mxu0 %v2237_v3  ;;  %2025 = vmatpush3.bf16.msra.mxu1 %v2237_v3  ;;  %v2255_v21 = vld [vmem:[%s2373_s8 + $0x30] sm:$0xff]   ;;  %v2257_v23 = vld [vmem:[%s2373_s8 + $0x38] sm:$0xff]   ;;  %v2259_v25 = vld [vmem:[%s2373_s8 + $0x40] sm:$0xff]  }
  0x18   : > { %1958 = vmatprep.subr.bf16.mxu0 %v2303_v1  ;;  %2026 = vmatprep.subr.bf16.mxu1 %v2303_v1  ;;  %v2256_v22 = vld [vmem:[%s2379_s11 + $0x30] sm:$0xff]   ;;  %v2258_v24 = vld [vmem:[%s2379_s11 + $0x38] sm:$0xff]   ;;  %v2260_v26 = vld [vmem:[%s2379_s11 + $0x40] sm:$0xff]  }
  0x19   : > { %v2261_v27 = vld [vmem:[%s2373_s8 + $0x48] sm:$0xff]   ;;  %v2263_v29 = vld [vmem:[%s2373_s8 + $0x50] sm:$0xff]   ;;  %v2265_v31 = vld [vmem:[%s2373_s8 + $0x58] sm:$0xff]  }
  0x1a   : > { %v2262_v28 = vld [vmem:[%s2379_s11 + $0x48] sm:$0xff]   ;;  %v2264_v30 = vld [vmem:[%s2379_s11 + $0x50] sm:$0xff]   ;;  %v2266_v32 = vld [vmem:[%s2379_s11 + $0x58] sm:$0xff]  }
  0x1b   : > { %1959 = vmatpush3.bf16.msra.mxu0 %v2238_v4  ;;  %2027 = vmatpush3.bf16.msra.mxu1 %v2238_v4  ;;  %v2267_v33 = vld [vmem:[%s2373_s8 + $0x60] ss:$0 sps:$4 sm:$0x33]   ;;  %v2271_v37 = vld [vmem:[%s2418_s25 + $0x8] sm:$0xff]   ;;  %v2273_v39 = vld [vmem:[%s2418_s25 + $0x10] sm:$0xff]  }
  0x1c   : > { %1960 = vmatprep.subr.bf16.mxu0 %v2303_v1  ;;  %2028 = vmatprep.subr.bf16.mxu1 %v2303_v1  ;;  %v2268_v34 = vld [vmem:[%s2379_s11 + $0x60] ss:$0 sps:$4 sm:$0x33]   ;;  %v2272_v38 = vld [vmem:[%s2424_s28 + $0x8] sm:$0xff]   ;;  %v2274_v40 = vld [vmem:[%s2424_s28 + $0x10] sm:$0xff]  }
  0x1d   : > { %v2269_v35 = vld [vmem:[%s2418_s25] sm:$0xff]   ;;  %v2275_v41 = vld [vmem:[%s2418_s25 + $0x18] sm:$0xff]   ;;  %v2279_v45 = vld [vmem:[%s2418_s25 + $0x28] sm:$0xff]  }
  0x1e   : > { %v2270_v36 = vld [vmem:[%s2424_s28] sm:$0xff]   ;;  %v2276_v42 = vld [vmem:[%s2424_s28 + $0x18] sm:$0xff]   ;;  %v2280_v46 = vld [vmem:[%s2424_s28 + $0x28] sm:$0xff]  }
  0x1f   : > { %1961 = vmatpush3.bf16.msra.mxu0 %v2239_v5  ;;  %2029 = vmatpush3.bf16.msra.mxu1 %v2239_v5  ;;  %v2277_v43 = vld [vmem:[%s2418_s25 + $0x20] sm:$0xff]   ;;  %v2281_v47 = vld [vmem:[%s2418_s25 + $0x30] sm:$0xff]   ;;  %v2283_v49 = vld [vmem:[%s2418_s25 + $0x38] sm:$0xff]  }
  0x20   : > { %1962 = vmatprep.subr.bf16.mxu0 %v2303_v1  ;;  %2030 = vmatprep.subr.bf16.mxu1 %v2303_v1  ;;  %v2278_v44 = vld [vmem:[%s2424_s28 + $0x20] sm:$0xff]   ;;  %v2282_v48 = vld [vmem:[%s2424_s28 + $0x30] sm:$0xff]   ;;  %v2284_v50 = vld [vmem:[%s2424_s28 + $0x38] sm:$0xff]  }
  0x21   : > { %v2285_v51 = vld [vmem:[%s2418_s25 + $0x40] sm:$0xff]   ;;  %v2287_v53 = vld [vmem:[%s2418_s25 + $0x48] sm:$0xff]   ;;  %v2289_v55 = vld [vmem:[%s2418_s25 + $0x50] sm:$0xff]  }
  0x22   : > { %v2286_v52 = vld [vmem:[%s2424_s28 + $0x40] sm:$0xff]   ;;  %v2288_v54 = vld [vmem:[%s2424_s28 + $0x48] sm:$0xff]   ;;  %v2290_v56 = vld [vmem:[%s2424_s28 + $0x50] sm:$0xff]  }
  0x23   : > { %1963 = vmatpush3.bf16.msra.mxu0 %v2240_v6  ;;  %2031 = vmatpush3.bf16.msra.mxu1 %v2240_v6  ;;  %v2291_v57 = vld [vmem:[%s2418_s25 + $0x58] sm:$0xff]   ;;  %v2293_v59 = vld [vmem:[%s2418_s25 + $0x60] ss:$0 sps:$4 sm:$0x33]  }
  0x24   : > { %1964 = vmatprep.subr.bf16.mxu0 %v2303_v1  ;;  %2032 = vmatprep.subr.bf16.mxu1 %v2303_v1  ;;  %v2292_v58 = vld [vmem:[%s2424_s28 + $0x58] sm:$0xff]   ;;  %v2294_v60 = vld [vmem:[%s2424_s28 + $0x60] ss:$0 sps:$4 sm:$0x33]  }
  0x27   : > { %1965 = vmatpush3.bf16.msra.mxu0 %v2241_v7  ;;  %2033 = vmatpush3.bf16.msra.mxu1 %v2241_v7 }
  0x28   : > { %1966 = vmatprep.subr.bf16.mxu0 %v2303_v1  ;;  %2034 = vmatprep.subr.bf16.mxu1 %v2303_v1 }
  0x2b   : > { %1967 = vmatpush3.bf16.msra.mxu0 %v2404_v8  ;;  %2035 = vmatpush3.bf16.msra.mxu1 %v2404_v8 }
  0x2c   : > { %2088 = vmatprep.subr.bf16.mxu0 %v2303_v1  ;;  %2156 = vmatprep.subr.bf16.mxu1 %v2303_v1 }
  0x2e   : > { %1969 = vmatmul.mubr.bf16.vlgmr.msra.gmra.mrb[0].mxu0 %v2243_v9  ;;  %2037 = vmatmul.mubr.bf16.vlgmr.msra.gmra.mrb[0].mxu1 %v2244_v10 }
  0x2f   : > { %2089 = vmatpush3.bf16.msra.mxu0 %v2235_v0  ;;  %2157 = vmatpush3.bf16.msra.mxu1 %v2235_v0 }
  0x30   : > { %1972 = vmatprep.mubr.msk.bf16.mxu0 %vm2304_vm0, %v2303_v1  ;;  %2040 = vmatprep.mubr.msk.bf16.mxu1 %vm2304_vm0, %v2303_v1 }
  0x31   : > { %2090 = vmatprep.subr.bf16.mxu0 %v2303_v1  ;;  %2158 = vmatprep.subr.bf16.mxu1 %v2303_v1 }
  0x33   : > { %2091 = vmatpush3.bf16.msra.mxu0 %v2236_v2  ;;  %2159 = vmatpush3.bf16.msra.mxu1 %v2236_v2 }
  0x34   : > { %2092 = vmatprep.subr.bf16.mxu0 %v2303_v1  ;;  %2160 = vmatprep.subr.bf16.mxu1 %v2303_v1 }
  0x36   : > { %1973 = vmatmul.mubr.bf16.gmra.mrb[4].mxu0 %v2245_v11  ;;  %2041 = vmatmul.mubr.bf16.gmra.mrb[4].mxu1 %v2246_v12 }
  0x37   : > { %1976 = vmatprep.mubr.msk.bf16.mxu0 %vm2304_vm0, %v2303_v1  ;;  %2044 = vmatprep.mubr.msk.bf16.mxu1 %vm2304_vm0, %v2303_v1 }
  0x38   : > { %2093 = vmatpush3.bf16.msra.mxu0 %v2237_v3  ;;  %2161 = vmatpush3.bf16.msra.mxu1 %v2237_v3 }
  0x39   : > { %2094 = vmatprep.subr.bf16.mxu0 %v2303_v1  ;;  %2162 = vmatprep.subr.bf16.mxu1 %v2303_v1 }
  0x3c   : > { %2095 = vmatpush3.bf16.msra.mxu0 %v2238_v4  ;;  %2163 = vmatpush3.bf16.msra.mxu1 %v2238_v4 }
  0x3d   : > { %2096 = vmatprep.subr.bf16.mxu0 %v2303_v1  ;;  %2164 = vmatprep.subr.bf16.mxu1 %v2303_v1 }
  0x3e   : > { %1977 = vmatmul.mubr.bf16.gmra.mrb[8].mxu0 %v2247_v13  ;;  %2045 = vmatmul.mubr.bf16.gmra.mrb[8].mxu1 %v2248_v14 }
  0x3f   : > { %1980 = vmatprep.mubr.msk.bf16.mxu0 %vm2304_vm0, %v2303_v1  ;;  %2048 = vmatprep.mubr.msk.bf16.mxu1 %vm2304_vm0, %v2303_v1 }
  0x40   : > { %2097 = vmatpush3.bf16.msra.mxu0 %v2239_v5  ;;  %2165 = vmatpush3.bf16.msra.mxu1 %v2239_v5 }
  0x41   : > { %2098 = vmatprep.subr.bf16.mxu0 %v2303_v1  ;;  %2166 = vmatprep.subr.bf16.mxu1 %v2303_v1 }
  0x44   : > { %2099 = vmatpush3.bf16.msra.mxu0 %v2240_v6  ;;  %2167 = vmatpush3.bf16.msra.mxu1 %v2240_v6 }
  0x45   : > { %2100 = vmatprep.subr.bf16.mxu0 %v2303_v1  ;;  %2168 = vmatprep.subr.bf16.mxu1 %v2303_v1 }
  0x46   : > { %1981 = vmatmul.mubr.bf16.gmra.mrb[12].mxu0 %v2249_v15  ;;  %2049 = vmatmul.mubr.bf16.gmra.mrb[12].mxu1 %v2250_v16 }
  0x47   : > { %1984 = vmatprep.mubr.msk.bf16.mxu0 %vm2304_vm0, %v2303_v1  ;;  %2052 = vmatprep.mubr.msk.bf16.mxu1 %vm2304_vm0, %v2303_v1 }
  0x48   : > { %2101 = vmatpush3.bf16.msra.mxu0 %v2241_v7  ;;  %2169 = vmatpush3.bf16.msra.mxu1 %v2241_v7 }
  0x49   : > { %2102 = vmatprep.subr.bf16.mxu0 %v2303_v1  ;;  %2170 = vmatprep.subr.bf16.mxu1 %v2303_v1 }
  0x4c   : > { %2103 = vmatpush3.bf16.msra.mxu0 %v2404_v8  ;;  %2171 = vmatpush3.bf16.msra.mxu1 %v2404_v8 }
  0x4e   : > { %1985 = vmatmul.mubr.bf16.gmra.mrb[16].mxu0 %v2251_v17  ;;  %2053 = vmatmul.mubr.bf16.gmra.mrb[16].mxu1 %v2252_v18 }
  0x4f   : > { %1988 = vmatprep.mubr.msk.bf16.mxu0 %vm2304_vm0, %v2303_v1  ;;  %2056 = vmatprep.mubr.msk.bf16.mxu1 %vm2304_vm0, %v2303_v1 }
  0x56   : > { %1989 = vmatmul.mubr.bf16.gmra.mrb[20].mxu0 %v2253_v19  ;;  %2057 = vmatmul.mubr.bf16.gmra.mrb[20].mxu1 %v2254_v20 }
  0x57   : > { %1992 = vmatprep.mubr.msk.bf16.mxu0 %vm2304_vm0, %v2303_v1  ;;  %2060 = vmatprep.mubr.msk.bf16.mxu1 %vm2304_vm0, %v2303_v1 }
  0x5e   : > { %1993 = vmatmul.mubr.bf16.gmra.mrb[24].mxu0 %v2255_v21  ;;  %2061 = vmatmul.mubr.bf16.gmra.mrb[24].mxu1 %v2256_v22 }
  0x5f   : > { %1996 = vmatprep.mubr.msk.bf16.mxu0 %vm2304_vm0, %v2303_v1  ;;  %2064 = vmatprep.mubr.msk.bf16.mxu1 %vm2304_vm0, %v2303_v1 }
  0x66   : > { %1997 = vmatmul.mubr.bf16.gmra.mrb[28].mxu0 %v2257_v23  ;;  %2065 = vmatmul.mubr.bf16.gmra.mrb[28].mxu1 %v2258_v24 }
  0x67   : > { %2000 = vmatprep.mubr.msk.bf16.mxu0 %vm2304_vm0, %v2303_v1  ;;  %2068 = vmatprep.mubr.msk.bf16.mxu1 %vm2304_vm0, %v2303_v1 }
  0x6e   : > { %2001 = vmatmul.mubr.bf16.gmra.mrb[32].mxu0 %v2259_v25  ;;  %2069 = vmatmul.mubr.bf16.gmra.mrb[32].mxu1 %v2260_v26 }
  0x6f   : > { %2004 = vmatprep.mubr.msk.bf16.mxu0 %vm2304_vm0, %v2303_v1  ;;  %2072 = vmatprep.mubr.msk.bf16.mxu1 %vm2304_vm0, %v2303_v1 }
  0x76   : > { %2005 = vmatmul.mubr.bf16.gmra.mrb[36].mxu0 %v2261_v27  ;;  %2073 = vmatmul.mubr.bf16.gmra.mrb[36].mxu1 %v2262_v28 }
  0x77   : > { %2008 = vmatprep.mubr.msk.bf16.mxu0 %vm2304_vm0, %v2303_v1  ;;  %2076 = vmatprep.mubr.msk.bf16.mxu1 %vm2304_vm0, %v2303_v1 }
  0x7e   : > { %2009 = vmatmul.mubr.bf16.gmra.mrb[40].mxu0 %v2263_v29  ;;  %2077 = vmatmul.mubr.bf16.gmra.mrb[40].mxu1 %v2264_v30 }
  0x7f   : > { %2012 = vmatprep.mubr.msk.bf16.mxu0 %vm2304_vm0, %v2303_v1  ;;  %2080 = vmatprep.mubr.msk.bf16.mxu1 %vm2304_vm0, %v2303_v1 }
  0x86   : > { %2013 = vmatmul.mubr.bf16.gmra.mrb[44].mxu0 %v2265_v31  ;;  %2081 = vmatmul.mubr.bf16.gmra.mrb[44].mxu1 %v2266_v32 }
  0x87   : > { %2016 = vmatprep.mubr.msk.bf16.mxu0 %vm2304_vm0, %v2303_v1  ;;  %2084 = vmatprep.mubr.msk.bf16.mxu1 %vm2304_vm0, %v2303_v1 }
  0x8e   : > { %2017 = vmatmul.mubr.bf16.gmra.mrb[48].mxu0 %v2267_v33  ;;  %2085 = vmatmul.mubr.bf16.gmra.mrb[48].mxu1 %v2268_v34 }
  0x8f   : > { %2104 = vmatprep.mubr.msk.bf16.mxu0 %vm2304_vm0, %v2303_v1  ;;  %2172 = vmatprep.mubr.msk.bf16.mxu1 %vm2304_vm0, %v2303_v1 }
  0x96   : > { %2105 = vmatmul.mubr.bf16.vlgmr.msra.gmra.mrb[52].mxu0 %v2269_v35  ;;  %2173 = vmatmul.mubr.bf16.vlgmr.msra.gmra.mrb[52].mxu1 %v2270_v36 }
  0x97   : > { %2108 = vmatprep.mubr.msk.bf16.mxu0 %vm2304_vm0, %v2303_v1  ;;  %2176 = vmatprep.mubr.msk.bf16.mxu1 %vm2304_vm0, %v2303_v1 }
  0x9e   : > { %2109 = vmatmul.mubr.bf16.gmra.mrb[56].mxu0 %v2271_v37  ;;  %2177 = vmatmul.mubr.bf16.gmra.mrb[56].mxu1 %v2272_v38 }
  0x9f   : > { %2112 = vmatprep.mubr.msk.bf16.mxu0 %vm2304_vm0, %v2303_v1  ;;  %2180 = vmatprep.mubr.msk.bf16.mxu1 %vm2304_vm0, %v2303_v1 }
  0xa6   : > { %2113 = vmatmul.mubr.bf16.gmra.mrb[60].mxu0 %v2273_v39  ;;  %2181 = vmatmul.mubr.bf16.gmra.mrb[60].mxu1 %v2274_v40 }
  0xa7   : > { %2116 = vmatprep.mubr.msk.bf16.mxu0 %vm2304_vm0, %v2303_v1  ;;  %2184 = vmatprep.mubr.msk.bf16.mxu1 %vm2304_vm0, %v2303_v1 }
  0xae   : > { %2117 = vmatmul.mubr.bf16.gmra.mrb[64].mxu0 %v2275_v41  ;;  %2185 = vmatmul.mubr.bf16.gmra.mrb[64].mxu1 %v2276_v42 }
  0xaf   : > { %2120 = vmatprep.mubr.msk.bf16.mxu0 %vm2304_vm0, %v2303_v1  ;;  %2188 = vmatprep.mubr.msk.bf16.mxu1 %vm2304_vm0, %v2303_v1 }
  0xb6   : > { %2121 = vmatmul.mubr.bf16.gmra.mrb[68].mxu0 %v2277_v43  ;;  %2189 = vmatmul.mubr.bf16.gmra.mrb[68].mxu1 %v2278_v44 }
  0xb7   : > { %2124 = vmatprep.mubr.msk.bf16.mxu0 %vm2304_vm0, %v2303_v1  ;;  %2192 = vmatprep.mubr.msk.bf16.mxu1 %vm2304_vm0, %v2303_v1 }
  0xbe   : > { %2125 = vmatmul.mubr.bf16.gmra.mrb[72].mxu0 %v2279_v45  ;;  %2193 = vmatmul.mubr.bf16.gmra.mrb[72].mxu1 %v2280_v46 }
  0xbf   : > { %2128 = vmatprep.mubr.msk.bf16.mxu0 %vm2304_vm0, %v2303_v1  ;;  %2196 = vmatprep.mubr.msk.bf16.mxu1 %vm2304_vm0, %v2303_v1 }
  0xc6   : > { %2129 = vmatmul.mubr.bf16.gmra.mrb[76].mxu0 %v2281_v47  ;;  %2197 = vmatmul.mubr.bf16.gmra.mrb[76].mxu1 %v2282_v48 }
  0xc7   : > { %2132 = vmatprep.mubr.msk.bf16.mxu0 %vm2304_vm0, %v2303_v1  ;;  %2200 = vmatprep.mubr.msk.bf16.mxu1 %vm2304_vm0, %v2303_v1 }
  0xce   : > { %2133 = vmatmul.mubr.bf16.gmra.mrb[80].mxu0 %v2283_v49  ;;  %2201 = vmatmul.mubr.bf16.gmra.mrb[80].mxu1 %v2284_v50 }
  0xcf   : > { %2136 = vmatprep.mubr.msk.bf16.mxu0 %vm2304_vm0, %v2303_v1  ;;  %2204 = vmatprep.mubr.msk.bf16.mxu1 %vm2304_vm0, %v2303_v1 }
  0xd6   : > { %2137 = vmatmul.mubr.bf16.gmra.mrb[84].mxu0 %v2285_v51  ;;  %2205 = vmatmul.mubr.bf16.gmra.mrb[84].mxu1 %v2286_v52 }
  0xd7   : > { %2140 = vmatprep.mubr.msk.bf16.mxu0 %vm2304_vm0, %v2303_v1  ;;  %2208 = vmatprep.mubr.msk.bf16.mxu1 %vm2304_vm0, %v2303_v1 }
  0xde   : > { %2141 = vmatmul.mubr.bf16.gmra.mrb[88].mxu0 %v2287_v53  ;;  %2209 = vmatmul.mubr.bf16.gmra.mrb[88].mxu1 %v2288_v54 }
  0xdf   : > { %2144 = vmatprep.mubr.msk.bf16.mxu0 %vm2304_vm0, %v2303_v1  ;;  %2212 = vmatprep.mubr.msk.bf16.mxu1 %vm2304_vm0, %v2303_v1 }
  0xe6   : > { %2145 = vmatmul.mubr.bf16.gmra.mrb[92].mxu0 %v2289_v55  ;;  %2213 = vmatmul.mubr.bf16.gmra.mrb[92].mxu1 %v2290_v56 }
  0xe7   : > { %2148 = vmatprep.mubr.msk.bf16.mxu0 %vm2304_vm0, %v2303_v1  ;;  %2216 = vmatprep.mubr.msk.bf16.mxu1 %vm2304_vm0, %v2303_v1 }
  0xee   : > { %2149 = vmatmul.mubr.bf16.gmra.mrb[96].mxu0 %v2291_v57  ;;  %2217 = vmatmul.mubr.bf16.gmra.mrb[96].mxu1 %v2292_v58 }
  0xef   : > { %2152 = vmatprep.mubr.msk.bf16.mxu0 %vm2304_vm0, %v2303_v1  ;;  %2220 = vmatprep.mubr.msk.bf16.mxu1 %vm2304_vm0, %v2303_v1  ;;  %v2748_v1 = vld [vmem:[%s2874_s5] ss:$0 sm:$0xff] }
  0xf6   : > { %2153 = vmatmul.mubr.bf16.gmra.mrb[100].mxu0 %v2293_v59  ;;  %2221 = vmatmul.mubr.bf16.gmra.mrb[100].mxu1 %v2294_v60 }
 0x101   : > { %v2592_v61 = vpop.f32.mrb[0].mxu0  ;;  %v2594_v62 = vpop.f32.mrb[0].mxu1 }
 0x102   : > { %v852_v63 = vmax.f32 %v2592_v61, %v2594_v62  ;;  %v1970_v0 = vpop.f32.mrb[1].mxu0  ;;  %v2038_v2 = vpop.f32.mrb[1].mxu1 }
 0x103   : > { %v2598_v3 = vpop.f32.mrb[2].mxu0  ;;  %v2600_v4 = vpop.f32.mrb[2].mxu1 }
 0x104   : > { %v1971_v5 = vpop.f32.mrb[3].mxu0  ;;  %v2039_v6 = vpop.f32.mrb[3].mxu1 }
 0x109   : > { %v2604_v7 = vpop.f32.mrb[4].mxu0  ;;  %v2606_v8 = vpop.f32.mrb[4].mxu1 }
 0x10a   : > { %v1974_v10 = vpop.f32.mrb[5].mxu0  ;;  %v2042_v11 = vpop.f32.mrb[5].mxu1 }
 0x10b   : > { %v2610_v12 = vpop.f32.mrb[6].mxu0  ;;  %v2612_v13 = vpop.f32.mrb[6].mxu1 }
 0x10c   : > { %v1975_v15 = vpop.f32.mrb[7].mxu0  ;;  %v2043_v16 = vpop.f32.mrb[7].mxu1 }
 0x111   : > { %v2616_v17 = vpop.f32.mrb[8].mxu0  ;;  %v2618_v18 = vpop.f32.mrb[8].mxu1 }
 0x112   : > { %v1978_v20 = vpop.f32.mrb[9].mxu0  ;;  %v2046_v21 = vpop.f32.mrb[9].mxu1 }
 0x113   : > { %v2622_v22 = vpop.f32.mrb[10].mxu0  ;;  %v2624_v23 = vpop.f32.mrb[10].mxu1 }
 0x114   : > { %v1979_v25 = vpop.f32.mrb[11].mxu0  ;;  %v2047_v26 = vpop.f32.mrb[11].mxu1 }
 0x119   : > { %v2628_v27 = vpop.f32.mrb[12].mxu0  ;;  %v2630_v28 = vpop.f32.mrb[12].mxu1 }
 0x11a   : > { %v1982_v30 = vpop.f32.mrb[13].mxu0  ;;  %v2050_v31 = vpop.f32.mrb[13].mxu1 }
 0x11b   : > { %v2634_v32 = vpop.f32.mrb[14].mxu0  ;;  %v2636_v33 = vpop.f32.mrb[14].mxu1 }
 0x11c   : > { %v1983_v35 = vpop.f32.mrb[15].mxu0  ;;  %v2051_v36 = vpop.f32.mrb[15].mxu1 }
 0x121   : > { %v2640_v37 = vpop.f32.mrb[16].mxu0  ;;  %v2642_v38 = vpop.f32.mrb[16].mxu1 }
 0x122   : > { %v1986_v40 = vpop.f32.mrb[17].mxu0  ;;  %v2054_v41 = vpop.f32.mrb[17].mxu1 }
 0x123   : > { %v2646_v42 = vpop.f32.mrb[18].mxu0  ;;  %v2648_v43 = vpop.f32.mrb[18].mxu1 }
 0x124   : > { %v1987_v45 = vpop.f32.mrb[19].mxu0  ;;  %v2055_v46 = vpop.f32.mrb[19].mxu1 }
 0x129   : > { %v2652_v47 = vpop.f32.mrb[20].mxu0  ;;  %v2654_v48 = vpop.f32.mrb[20].mxu1 }
 0x12a   : > { %v1990_v50 = vpop.f32.mrb[21].mxu0  ;;  %v2058_v51 = vpop.f32.mrb[21].mxu1 }
 0x12b   : > { %v2658_v52 = vpop.f32.mrb[22].mxu0  ;;  %v2660_v53 = vpop.f32.mrb[22].mxu1 }
 0x12c   : > { %v1991_v55 = vpop.f32.mrb[23].mxu0  ;;  %v2059_v56 = vpop.f32.mrb[23].mxu1 }
 0x131   : > { %v2664_v57 = vpop.f32.mrb[24].mxu0  ;;  %v2666_v58 = vpop.f32.mrb[24].mxu1 }
 0x132   : > { %v1994_v60 = vpop.f32.mrb[25].mxu0  ;;  %v2062_v0 = vpop.f32.mrb[25].mxu1 }
 0x133   : > { %v2670_v2 = vpop.f32.mrb[26].mxu0  ;;  %v2672_v5 = vpop.f32.mrb[26].mxu1 }
 0x134   : > { %v1995_v10 = vpop.f32.mrb[27].mxu0  ;;  %v2063_v11 = vpop.f32.mrb[27].mxu1 }
 0x139   : > { %v2676_v15 = vpop.f32.mrb[28].mxu0  ;;  %v2678_v16 = vpop.f32.mrb[28].mxu1 }
 0x13a   : > { %v1998_v21 = vpop.f32.mrb[29].mxu0  ;;  %v2066_v25 = vpop.f32.mrb[29].mxu1 }
 0x13b   : > { %v2682_v26 = vpop.f32.mrb[30].mxu0  ;;  %v2684_v30 = vpop.f32.mrb[30].mxu1 }
 0x13c   : > { %v1999_v35 = vpop.f32.mrb[31].mxu0  ;;  %v2067_v36 = vpop.f32.mrb[31].mxu1 }
 0x141   : > { %v2688_v40 = vpop.f32.mrb[32].mxu0  ;;  %v2690_v41 = vpop.f32.mrb[32].mxu1 }
 0x142   : > { %v2002_v46 = vpop.f32.mrb[33].mxu0  ;;  %v2070_v50 = vpop.f32.mrb[33].mxu1 }
 0x143   : > { %v2694_v51 = vpop.f32.mrb[34].mxu0  ;;  %v2696_v55 = vpop.f32.mrb[34].mxu1 }
 0x144   : > { %v2003_v60 = vpop.f32.mrb[35].mxu0  ;;  %v2071_v0 = vpop.f32.mrb[35].mxu1 }
 0x149   : > { %v2700_v10 = vpop.f32.mrb[36].mxu0  ;;  %v2702_v11 = vpop.f32.mrb[36].mxu1 }
 0x14a   : > { %v2006_v25 = vpop.f32.mrb[37].mxu0  ;;  %v2074_v35 = vpop.f32.mrb[37].mxu1 }
 0x14b   : > { %v2706_v36 = vpop.f32.mrb[38].mxu0  ;;  %v2708_v46 = vpop.f32.mrb[38].mxu1 }
 0x14c   : > { %v2007_v45 = vpop.f32.mrb[39].mxu0  ;;  %v2075_v56 = vpop.f32.mrb[39].mxu1 }
 0x151   : > { %v2712_v60 = vpop.f32.mrb[40].mxu0  ;;  %v2714_v0 = vpop.f32.mrb[40].mxu1 }
 0x152   : > { %v2010_v20 = vpop.f32.mrb[41].mxu0  ;;  %v2078_v21 = vpop.f32.mrb[41].mxu1 }
 0x153   : > { %v2718_v25 = vpop.f32.mrb[42].mxu0  ;;  %v2720_v35 = vpop.f32.mrb[42].mxu1 }
 0x154   : > { %v2011_v59 = vpop.f32.mrb[43].mxu0  ;;  %v2079_v50 = vpop.f32.mrb[43].mxu1 }
 0x159   : > { %v2724_v45 = vpop.f32.mrb[44].mxu0  ;;  %v2726_v56 = vpop.f32.mrb[44].mxu1 }
 0x15a   : > { %v2014_v49 = vpop.f32.mrb[45].mxu0  ;;  %v2082_v31 = vpop.f32.mrb[45].mxu1 }
 0x15b   : > { %v2730_v20 = vpop.f32.mrb[46].mxu0  ;;  %v2732_v21 = vpop.f32.mrb[46].mxu1 }
 0x15c   : > { %2879 = vst [vmem:[#allocation2_spill] sm:$0xff] %v2732_v21  ;;  %v2015_v39 = vpop.f32.mrb[47].mxu0  ;;  %v2083_v6 = vpop.f32.mrb[47].mxu1 }
 0x161   : > { %v2736_v59 = vpop.f32.mrb[48].mxu0  ;;  %v2738_v50 = vpop.f32.mrb[48].mxu1 }
 0x162   : > { %2880 = vst [vmem:[#allocation3_spill] sm:$0xff] %v2736_v59  ;;  %2881 = vst [vmem:[#allocation4_spill] sm:$0xff] %v2738_v50  ;;  %v2018_v29 = vpop.f32.mrb[49].mxu0  ;;  %v2086_v54 = vpop.f32.mrb[49].mxu1  ;;  %v2883_v59 = vmax.f32 %v2604_v7, %v2606_v8 }
 0x163   : > { %v612_v49 = vpop.f32.mrb[50].mxu0  ;;  %v849_v31 = vpop.f32.mrb[50].mxu1 }
 0x164   : > { %v2019_v24 = vpop.f32.mrb[51].mxu0  ;;  %v2087_v19 = vpop.f32.mrb[51].mxu1 }
 0x165   : > { %v2882_v19 = vmax.f32 %v2598_v3, %v2600_v4 }
 0x169   : > { %v1012_v14 = vpop.f32.mrb[52].mxu0  ;;  %v1274_v9 = vpop.f32.mrb[52].mxu1 }
 0x16a   : > { %v1114_v39 = vmax.f32 %v852_v63, %v1012_v14  ;;  %v2106_v6 = vpop.f32.mrb[53].mxu0  ;;  %v2174_v44 = vpop.f32.mrb[53].mxu1 }
 0x16b   : > { %v1015_v34 = vpop.f32.mrb[54].mxu0  ;;  %v1277_v29 = vpop.f32.mrb[54].mxu1 }
 0x16c   : > { %v1376_v54 = vmax.f32 %v1114_v39, %v1274_v9  ;;  %v1115_v24 = vmax.f32 %v2882_v19, %v1015_v34  ;;  %v2107_v49 = vpop.f32.mrb[55].mxu0  ;;  %v2175_v31 = vpop.f32.mrb[55].mxu1 }
 0x16e   : > { %v1407_v61 = vadd.f32 %v2748_v1, %v1376_v54  ;;  %v1377_v62 = vmax.f32 %v1115_v24, %v1277_v29  ;;  %v2884_v54 = vmax.f32 %v2610_v12, %v2612_v13 }
 0x170   : > { %v1408_v63 = vadd.f32 %v2748_v1, %v1377_v62  ;;  %v1432_v6 = vmax.f32 %v1407_v61, 0.0 }
 0x171   : > { %v1020_v14 = vpop.f32.mrb[56].mxu0  ;;  %v1282_v44 = vpop.f32.mrb[56].mxu1 }
 0x172   : > { %v1433_v50 = vmax.f32 %v1408_v63, 0.0  ;;  %v1116_v21 = vmax.f32 %v2883_v59, %v1020_v14  ;;  %v2110_v9 = vpop.f32.mrb[57].mxu0  ;;  %v2178_v39 = vpop.f32.mrb[57].mxu1 }
 0x173   : > { %v1023_v3 = vpop.f32.mrb[58].mxu0  ;;  %v1285_v4 = vpop.f32.mrb[58].mxu1  ;;  %v2886_v39 = vmax.f32 %v2622_v22, %v2624_v23 }
 0x174   : > { %v1800_v34 = vpack.c.bf16 %v1433_v50, %v1432_v6  ;;  %v1378_v29 = vmax.f32 %v1116_v21, %v1282_v44  ;;  %v1117_v19 = vmax.f32 %v2884_v54, %v1023_v3  ;;  %v2111_v24 = vpop.f32.mrb[59].mxu0  ;;  %v2179_v49 = vpop.f32.mrb[59].mxu1  ;;  %v2885_v21 = vmax.f32 %v2616_v17, %v2618_v18 }
 0x176   : > { %1801 = vst [vmem:[%s2762_s10] sm:$0xff] %v1800_v34   ;;  %v1409_v7 = vadd.f32 %v2748_v1, %v1378_v29  ;;  %v1379_v8 = vmax.f32 %v1117_v19, %v1285_v4 }
 0x178   : > { %v1410_v59 = vadd.f32 %v2748_v1, %v1379_v8  ;;  %v1434_v62 = vmax.f32 %v1409_v7, 0.0  ;;  %v2887_v7 = vmax.f32 %v2628_v27, %v2630_v28 }
 0x179   : > { %v1028_v31 = vpop.f32.mrb[60].mxu0  ;;  %v1290_v61 = vpop.f32.mrb[60].mxu1 }
 0x17a   : > { %v1435_v63 = vmax.f32 %v1410_v59, 0.0  ;;  %v1118_v50 = vmax.f32 %v2885_v21, %v1028_v31  ;;  %v2114_v14 = vpop.f32.mrb[61].mxu0  ;;  %v2182_v12 = vpop.f32.mrb[61].mxu1 }
 0x17b   : > { %v1031_v13 = vpop.f32.mrb[62].mxu0  ;;  %v1293_v44 = vpop.f32.mrb[62].mxu1 }
 0x17c   : > { %v1805_v6 = vpack.c.bf16 %v1435_v63, %v1434_v62  ;;  %v1380_v9 = vmax.f32 %v1118_v50, %v1290_v61  ;;  %v1119_v3 = vmax.f32 %v2886_v39, %v1031_v13  ;;  %v2115_v4 = vpop.f32.mrb[63].mxu0  ;;  %v2183_v34 = vpop.f32.mrb[63].mxu1  ;;  %v2888_v63 = vmax.f32 %v2634_v32, %v2636_v33 }
 0x17d   : > { %v2889_v39 = vmax.f32 %v2640_v37, %v2642_v38 }
 0x17e   : > { %1857 = vst [vmem:[%s2762_s10 + $0x8] sm:$0xff] %v1805_v6   ;;  %v1411_v29 = vadd.f32 %v2748_v1, %v1380_v9  ;;  %v1381_v54 = vmax.f32 %v1119_v3, %v1293_v44 }
 0x180   : > { %v1412_v17 = vadd.f32 %v2748_v1, %v1381_v54  ;;  %v1436_v24 = vmax.f32 %v1411_v29, 0.0 }
 0x181   : > { %v1036_v18 = vpop.f32.mrb[64].mxu0  ;;  %v1298_v19 = vpop.f32.mrb[64].mxu1 }
 0x182   : > { %v1437_v49 = vmax.f32 %v1412_v17, 0.0  ;;  %v1120_v8 = vmax.f32 %v2887_v7, %v1036_v18  ;;  %v2118_v59 = vpop.f32.mrb[65].mxu0  ;;  %v2186_v22 = vpop.f32.mrb[65].mxu1  ;;  %v2890_v17 = vmax.f32 %v2646_v42, %v2648_v43 }
 0x183   : > { %v1039_v23 = vpop.f32.mrb[66].mxu0  ;;  %v1301_v31 = vpop.f32.mrb[66].mxu1 }
 0x184   : > { %v1810_v61 = vpack.c.bf16 %v1437_v49, %v1436_v24  ;;  %v1382_v62 = vmax.f32 %v1120_v8, %v1298_v19  ;;  %v1121_v21 = vmax.f32 %v2888_v63, %v1039_v23  ;;  %v2119_v50 = vpop.f32.mrb[67].mxu0  ;;  %v2187_v14 = vpop.f32.mrb[67].mxu1  ;;  %v2891_v23 = vmax.f32 %v2652_v47, %v2654_v48 }
 0x185   : > { %v2892_v50 = vmax.f32 %v2658_v52, %v2660_v53 }
 0x186   : > { %1858 = vst [vmem:[%s2762_s10 + $0x10] sm:$0xff] %v1810_v61   ;;  %v1413_v12 = vadd.f32 %v2748_v1, %v1382_v62  ;;  %v1383_v13 = vmax.f32 %v1121_v21, %v1301_v31 }
 0x188   : > { %v1414_v27 = vadd.f32 %v2748_v1, %v1383_v13  ;;  %v1438_v6 = vmax.f32 %v1413_v12, 0.0 }
 0x189   : > { %v1044_v28 = vpop.f32.mrb[68].mxu0  ;;  %v1306_v44 = vpop.f32.mrb[68].mxu1 }
 0x18a   : > { %v1439_v9 = vmax.f32 %v1414_v27, 0.0  ;;  %v1122_v3 = vmax.f32 %v2889_v39, %v1044_v28  ;;  %v2122_v4 = vpop.f32.mrb[69].mxu0  ;;  %v2190_v32 = vpop.f32.mrb[69].mxu1  ;;  %v2893_v39 = vmax.f32 %v2664_v57, %v2666_v58 }
 0x18b   : > { %v1047_v33 = vpop.f32.mrb[70].mxu0  ;;  %v1309_v34 = vpop.f32.mrb[70].mxu1 }
 0x18c   : > { %v1815_v29 = vpack.c.bf16 %v1439_v9, %v1438_v6  ;;  %v1384_v54 = vmax.f32 %v1122_v3, %v1306_v44  ;;  %v1123_v18 = vmax.f32 %v2890_v17, %v1047_v33  ;;  %v2123_v19 = vpop.f32.mrb[71].mxu0  ;;  %v2191_v24 = vpop.f32.mrb[71].mxu1 }
 0x18e   : > { %1859 = vst [vmem:[%s2762_s10 + $0x18] sm:$0xff] %v1815_v29   ;;  %v1415_v49 = vadd.f32 %v2748_v1, %v1384_v54  ;;  %v1385_v7 = vmax.f32 %v1123_v18, %v1309_v34  ;;  %v2894_v29 = vmax.f32 %v2670_v2, %v2672_v5 }
 0x190   : > { %v1416_v37 = vadd.f32 %v2748_v1, %v1385_v7  ;;  %v1440_v59 = vmax.f32 %v1415_v49, 0.0 }
 0x191   : > { %v1052_v38 = vpop.f32.mrb[72].mxu0  ;;  %v1314_v8 = vpop.f32.mrb[72].mxu1 }
 0x192   : > { %v1441_v22 = vmax.f32 %v1416_v37, 0.0  ;;  %v1124_v31 = vmax.f32 %v2891_v23, %v1052_v38  ;;  %v2126_v61 = vpop.f32.mrb[73].mxu0  ;;  %v2194_v42 = vpop.f32.mrb[73].mxu1  ;;  %v2895_v38 = vmax.f32 %v2676_v15, %v2678_v16 }
 0x193   : > { %v1055_v43 = vpop.f32.mrb[74].mxu0  ;;  %v1317_v62 = vpop.f32.mrb[74].mxu1  ;;  %v2896_v61 = vmax.f32 %v2682_v26, %v2684_v30 }
 0x194   : > { %v1820_v63 = vpack.c.bf16 %v1441_v22, %v1440_v59  ;;  %v1386_v21 = vmax.f32 %v1124_v31, %v1314_v8  ;;  %v1125_v14 = vmax.f32 %v2892_v50, %v1055_v43  ;;  %v2127_v12 = vpop.f32.mrb[75].mxu0  ;;  %v2195_v13 = vpop.f32.mrb[75].mxu1 }
 0x195   : > { %v2897_v13 = vmax.f32 %v2688_v40, %v2690_v41 }
 0x196   : > { %1860 = vst [vmem:[%s2762_s10 + $0x20] sm:$0xff] %v1820_v63   ;;  %v1417_v27 = vadd.f32 %v2748_v1, %v1386_v21  ;;  %v1387_v28 = vmax.f32 %v1125_v14, %v1317_v62 }
 0x198   : > { %v1418_v47 = vadd.f32 %v2748_v1, %v1387_v28  ;;  %v1442_v6 = vmax.f32 %v1417_v27, 0.0 }
 0x199   : > { %v1060_v48 = vpop.f32.mrb[76].mxu0  ;;  %v1322_v44 = vpop.f32.mrb[76].mxu1 }
 0x19a   : > { %v1443_v9 = vmax.f32 %v1418_v47, 0.0  ;;  %v1126_v3 = vmax.f32 %v2893_v39, %v1060_v48  ;;  %v2130_v4 = vpop.f32.mrb[77].mxu0  ;;  %v2198_v52 = vpop.f32.mrb[77].mxu1 }
 0x19b   : > { %v1063_v53 = vpop.f32.mrb[78].mxu0  ;;  %v1325_v32 = vpop.f32.mrb[78].mxu1 }
 0x19c   : > { %v1825_v33 = vpack.c.bf16 %v1443_v9, %v1442_v6  ;;  %v1388_v34 = vmax.f32 %v1126_v3, %v1322_v44  ;;  %v1127_v54 = vmax.f32 %v2894_v29, %v1063_v53  ;;  %v2131_v17 = vpop.f32.mrb[79].mxu0  ;;  %v2199_v18 = vpop.f32.mrb[79].mxu1  ;;  %v2898_v6 = vmax.f32 %v2694_v51, %v2696_v55 }
 0x19e   : > { %1861 = vst [vmem:[%s2762_s10 + $0x28] sm:$0xff] %v1825_v33   ;;  %v1419_v19 = vadd.f32 %v2748_v1, %v1388_v34  ;;  %v1389_v24 = vmax.f32 %v1127_v54, %v1325_v32  ;;  %v2899_v34 = vmax.f32 %v2700_v10, %v2702_v11 }
 0x1a0   : > { %v1420_v57 = vadd.f32 %v2748_v1, %v1389_v24  ;;  %v1444_v7 = vmax.f32 %v1419_v19, 0.0  ;;  %v2900_v24 = vmax.f32 %v2706_v36, %v2708_v46 }
 0x1a1   : > { %v1068_v58 = vpop.f32.mrb[80].mxu0  ;;  %v1330_v49 = vpop.f32.mrb[80].mxu1 }
 0x1a2   : > { %v1445_v37 = vmax.f32 %v1420_v57, 0.0  ;;  %v1128_v8 = vmax.f32 %v2895_v38, %v1068_v58  ;;  %v2134_v59 = vpop.f32.mrb[81].mxu0  ;;  %v2202_v2 = vpop.f32.mrb[81].mxu1 }
 0x1a3   : > { %v1071_v5 = vpop.f32.mrb[82].mxu0  ;;  %v1333_v22 = vpop.f32.mrb[82].mxu1  ;;  %v2901_v2 = vmax.f32 %v2712_v60, %v2714_v0 }
 0x1a4   : > { %v1830_v23 = vpack.c.bf16 %v1445_v37, %v1444_v7  ;;  %v1390_v31 = vmax.f32 %v1128_v8, %v1330_v49  ;;  %v1129_v42 = vmax.f32 %v2896_v61, %v1071_v5  ;;  %v2135_v43 = vpop.f32.mrb[83].mxu0  ;;  %v2203_v62 = vpop.f32.mrb[83].mxu1 }
 0x1a6   : > { %1862 = vst [vmem:[%s2762_s10 + $0x30] sm:$0xff] %v1830_v23   ;;  %v1421_v63 = vadd.f32 %v2748_v1, %v1390_v31  ;;  %v1391_v21 = vmax.f32 %v1129_v42, %v1333_v22  ;;  %v2902_v42 = vmax.f32 %v2718_v25, %v2720_v35 }
 0x1a8   : > { %v1422_v15 = vadd.f32 %v2748_v1, %v1391_v21  ;;  %v1446_v14 = vmax.f32 %v1421_v63, 0.0 }
 0x1a9   : > { %v1076_v16 = vpop.f32.mrb[84].mxu0  ;;  %v1338_v50 = vpop.f32.mrb[84].mxu1 }
 0x1aa   : > { %v1447_v12 = vmax.f32 %v1422_v15, 0.0  ;;  %v1130_v27 = vmax.f32 %v2897_v13, %v1076_v16  ;;  %v2138_v28 = vpop.f32.mrb[85].mxu0  ;;  %v2206_v26 = vpop.f32.mrb[85].mxu1 }
 0x1ab   : > { %v1079_v30 = vpop.f32.mrb[86].mxu0  ;;  %v1341_v47 = vpop.f32.mrb[86].mxu1 }
 0x1ac   : > { %v1835_v48 = vpack.c.bf16 %v1447_v12, %v1446_v14  ;;  %v1392_v44 = vmax.f32 %v1130_v27, %v1338_v50  ;;  %v1131_v9 = vmax.f32 %v2898_v6, %v1079_v30  ;;  %v2139_v39 = vpop.f32.mrb[87].mxu0  ;;  %v2207_v3 = vpop.f32.mrb[87].mxu1  ;;  %v2903_v12 = vmax.f32 %v2724_v45, %v2726_v56 }
 0x1ae   : > { %1863 = vst [vmem:[%s2762_s10 + $0x38] sm:$0xff] %v1835_v48   ;;  %v1423_v4 = vadd.f32 %v2748_v1, %v1392_v44  ;;  %v1393_v52 = vmax.f32 %v1131_v9, %v1341_v47  ;;  %v2904_v47 = vld [vmem:[#allocation2_spill] sm:$0xff] }
 0x1af   : > { %v2905_v48 = vmax.f32 %v2730_v20, %v2904_v47 }
 0x1b0   : > { %v1424_v40 = vadd.f32 %v2748_v1, %v1393_v52  ;;  %v1448_v32 = vmax.f32 %v1423_v4, 0.0 }
 0x1b1   : > { %v1084_v41 = vpop.f32.mrb[88].mxu0  ;;  %v1346_v53 = vpop.f32.mrb[88].mxu1 }
 0x1b2   : > { %v1449_v33 = vmax.f32 %v1424_v40, 0.0  ;;  %v1132_v29 = vmax.f32 %v2899_v34, %v1084_v41  ;;  %v2142_v54 = vpop.f32.mrb[89].mxu0  ;;  %v2210_v51 = vpop.f32.mrb[89].mxu1  ;;  %v2906_v41 = vld [vmem:[#allocation3_spill] sm:$0xff] }
 0x1b3   : > { %v1087_v55 = vpop.f32.mrb[90].mxu0  ;;  %v1349_v17 = vpop.f32.mrb[90].mxu1 }
 0x1b4   : > { %v1840_v18 = vpack.c.bf16 %v1449_v33, %v1448_v32  ;;  %v1394_v19 = vmax.f32 %v1132_v29, %v1346_v53  ;;  %v1133_v57 = vmax.f32 %v2900_v24, %v1087_v55  ;;  %v2143_v58 = vpop.f32.mrb[91].mxu0  ;;  %v2211_v49 = vpop.f32.mrb[91].mxu1  ;;  %v2907_v53 = vld [vmem:[#allocation4_spill] sm:$0xff] }
 0x1b5   : > { %v2908_v32 = vmax.f32 %v2906_v41, %v2907_v53 }
 0x1b6   : > { %1864 = vst [vmem:[%s2762_s10 + $0x40] sm:$0xff] %v1840_v18   ;;  %v1425_v7 = vadd.f32 %v2748_v1, %v1394_v19  ;;  %v1395_v37 = vmax.f32 %v1133_v57, %v1349_v17 }
 0x1b8   : > { %v1426_v10 = vadd.f32 %v2748_v1, %v1395_v37  ;;  %v1450_v8 = vmax.f32 %v1425_v7, 0.0 }
 0x1b9   : > { %v1092_v11 = vpop.f32.mrb[92].mxu0  ;;  %v1354_v38 = vpop.f32.mrb[92].mxu1 }
 0x1ba   : > { %v1451_v59 = vmax.f32 %v1426_v10, 0.0  ;;  %v1134_v5 = vmax.f32 %v2901_v2, %v1092_v11  ;;  %v2146_v22 = vpop.f32.mrb[93].mxu0  ;;  %v2214_v36 = vpop.f32.mrb[93].mxu1 }
 0x1bb   : > { %v1095_v46 = vpop.f32.mrb[94].mxu0  ;;  %v1357_v23 = vpop.f32.mrb[94].mxu1 }
 0x1bc   : > { %v1845_v31 = vpack.c.bf16 %v1451_v59, %v1450_v8  ;;  %v1396_v61 = vmax.f32 %v1134_v5, %v1354_v38  ;;  %v1135_v43 = vmax.f32 %v2902_v42, %v1095_v46  ;;  %v2147_v62 = vpop.f32.mrb[95].mxu0  ;;  %v2215_v63 = vpop.f32.mrb[95].mxu1 }
 0x1be   : > { %1865 = vst [vmem:[%s2762_s10 + $0x48] sm:$0xff] %v1845_v31   ;;  %v1427_v21 = vadd.f32 %v2748_v1, %v1396_v61  ;;  %v1397_v15 = vmax.f32 %v1135_v43, %v1357_v23 }
 0x1c0   : > { %v1428_v60 = vadd.f32 %v2748_v1, %v1397_v15  ;;  %v1452_v50 = vmax.f32 %v1427_v21, 0.0 }
 0x1c1   : > { %v1100_v0 = vpop.f32.mrb[96].mxu0  ;;  %v1362_v16 = vpop.f32.mrb[96].mxu1 }
 0x1c2   : > { %v1453_v14 = vmax.f32 %v1428_v60, 0.0  ;;  %v1136_v13 = vmax.f32 %v2903_v12, %v1100_v0  ;;  %v2150_v27 = vpop.f32.mrb[97].mxu0  ;;  %v2218_v25 = vpop.f32.mrb[97].mxu1 }
 0x1c3   : > { %v1103_v35 = vpop.f32.mrb[98].mxu0  ;;  %v1365_v28 = vpop.f32.mrb[98].mxu1 }
 0x1c4   : > { %v1850_v26 = vpack.c.bf16 %v1453_v14, %v1452_v50  ;;  %v1398_v30 = vmax.f32 %v1136_v13, %v1362_v16  ;;  %v1137_v44 = vmax.f32 %v2905_v48, %v1103_v35  ;;  %v2151_v6 = vpop.f32.mrb[99].mxu0  ;;  %v2219_v9 = vpop.f32.mrb[99].mxu1 }
 0x1c6   : > { %1866 = vst [vmem:[%s2762_s10 + $0x50] sm:$0xff] %v1850_v26   ;;  %v1429_v39 = vadd.f32 %v2748_v1, %v1398_v30  ;;  %v1399_v3 = vmax.f32 %v1137_v44, %v1365_v28 }
 0x1c8   : > { %v1430_v45 = vadd.f32 %v2748_v1, %v1399_v3  ;;  %v1454_v52 = vmax.f32 %v1429_v39, 0.0 }
 0x1c9   : > { %v1108_v56 = vpop.f32.mrb[100].mxu0  ;;  %v1370_v4 = vpop.f32.mrb[100].mxu1 }
 0x1ca   : > { %v1455_v40 = vmax.f32 %v1430_v45, 0.0  ;;  %v1138_v33 = vmax.f32 %v2908_v32, %v1108_v56  ;;  %v2154_v20 = vpop.f32.mrb[101].mxu0  ;;  %v2222_v34 = vpop.f32.mrb[101].mxu1 }
 0x1cb   : > { %v1111_v29 = vpop.f32.mrb[102].mxu0  ;;  %v1373_v54 = vpop.f32.mrb[102].mxu1 }
 0x1cc   : > { %v1855_v51 = vpack.c.bf16 %v1455_v40, %v1454_v52  ;;  %v1400_v55 = vmax.f32 %v1138_v33, %v1370_v4  ;;  %v2155_v17 = vpop.f32.mrb[103].mxu0  ;;  %v2223_v18 = vpop.f32.mrb[103].mxu1 }
 0x1ce   : > { %1867 = vst [vmem:[%s2762_s10 + $0x58] sm:$0xff] %v1855_v51   ;;  %v1431_v19 = vadd.f32 %v2748_v1, %v1400_v55 }
 0x1d0   : > { %v1456_v24 = vmax.f32 %v1431_v19, 0.0 }
 0x1d2   : > { %v1796_v57 = vpack.c.bf16 %v1456_v24, %v1456_v24 }
 0x1d4   : > { %1582 = vst [vmem:[%s2762_s10 + $0x60] sm:$0x3] %v1796_v57 }
 0x1d5 PF: > { %s16_s21 = sadd.s32 1, %s2301_s21  }
 0x1d6   : > { %p13_p4 = scmp.ge.s32.totalorder %s16_s21, 4  }
 0x1d8   :  { %15 = sbr.rel (!%p13_p4) target bundleno = 1 (0x1), region = 83 }

// kernel: cnn_cifar_forward.4
= control target key start
LH: loop header
LB: loop body
LE: loop exit
PB: predicated region body
PF: predicated region fallthrough
CT: control target
= control target key end

     0   :  { %s1147_s21 = smov 0   ;;  %s1306_s0 = inlined_call_operand.vmem [shape: bf16[2,25,256], index: 0, kind: input, shape index: {}]   ;;  %s1307_s1 = inlined_call_operand.vmem [shape: bf16[2,25,256], index: 1, kind: input, shape index: {}]   ;;  %s1308_s2 = inlined_call_operand.vmem [shape: bf16[2,25,256], index: 2, kind: input, shape index: {}]   ;;  %s1309_s3 = inlined_call_operand.vmem [shape: bf16[2,25,256], index: 3, kind: input, shape index: {}]   ;;  %s1310_s4 = inlined_call_operand.vmem [shape: bf16[256,128], index: 4, kind: input, shape index: {}]   ;;  %s1311_s5 = inlined_call_operand.vmem [shape: f32[1,128], index: 5, kind: input, shape index: {}]   ;;  %s1312_s6 = inlined_call_operand.vmem [shape: bf16[2,25,128], index: 6, kind: output, shape index: {}]  }
   0x1 LB: > { %s876_s22 = sadd.s32 4294967295, %s1110_s21   ;;  %p880_p0 = scmp.ge.s32.totalorder %s1110_s21, 1  ;;  %s1110_s21 = sphi %s1147_s21, %s16_s21  }
   0x2   : > { %p242_p1 = scmp.lt.s32.totalorder %s1110_s21, 3 }
   0x4   : > { %p243_p2 = pnand %p880_p0, %p242_p1 }
   0x5   : > { %v1064_v0 = vld [vmem:[%s1310_s4 + $0x40] sm:$0xff] (!%p243_p2)   ;;  %v1166_v2 = vld [vmem:[%s1310_s4 + $0x48] sm:$0xff] (!%p243_p2)   ;;  %p287_p3 = scmp.lt.s32.totalorder (!%p243_p2), %s876_s22, 1  ;;  %v1180_v4 = vld [vmem:[%s1310_s4 + $0x50] sm:$0xff] (!%p243_p2)   ;;  %vm779_vm0 = vcmask (!%p243_p2), 1040384  }
   0x6   : > { %246 = sbr.rel (%p243_p2) target bundleno = 307 (0x133), region = 44  ;;  %v1161_v1 = vld [vmem:[%s1310_s4] sm:$0xff] (!%p243_p2)   ;;  %944 = vmatprep.subr.bf16.mxu0 (!%p243_p2), %v1064_v0  ;;  %972 = vmatprep.subr.bf16.mxu1 (!%p243_p2), %v1064_v0  ;;  %v1173_v3 = vld [vmem:[%s1310_s4 + $0x8] sm:$0xff] (!%p243_p2)   ;;  %v1187_v5 = vld [vmem:[%s1310_s4 + $0x10] sm:$0xff] (!%p243_p2)   ;;  %vm780_vm1 = vsmask.f32 (!%p243_p2), 256 }
   0x7   : > { %945 = vmatpush3.bf16.msra.mxu0 (!%p243_p2), %v1161_v1  ;;  %973 = vmatpush3.bf16.msra.mxu1 (!%p243_p2), %v1161_v1  ;;  %v1196_v6 = vld [vmem:[%s1310_s4 + $0x58] sm:$0xff] (!%p243_p2)   ;;  %v1211_v8 = vld [vmem:[%s1310_s4 + $0x60] sm:$0xff] (!%p243_p2)   ;;  %v1074_v10 = vld [vmem:[%s1310_s4 + $0x68] sm:$0xff] (!%p243_p2)  }
   0x8   : > { %946 = vmatprep.subr.bf16.mxu0 (!%p243_p2), %v1166_v2  ;;  %974 = vmatprep.subr.bf16.mxu1 (!%p243_p2), %v1166_v2  ;;  %v1203_v7 = vld [vmem:[%s1310_s4 + $0x18] sm:$0xff] (!%p243_p2)   ;;  %v1223_v9 = vld [vmem:[%s1310_s4 + $0x20] sm:$0xff] (!%p243_p2)   ;;  %v1075_v13 = vld [vmem:[%s1310_s4 + $0x28] sm:$0xff] (!%p243_p2)  }
   0x9   : > { %v1076_v14 = vld [vmem:[%s1310_s4 + $0x70] sm:$0xff] (!%p243_p2)   ;;  %v1078_v16 = vld [vmem:[%s1310_s4 + $0x78] sm:$0xff] (!%p243_p2)   ;;  %vm781_vm2 = vmand (!%p243_p2), %vm779_vm0, %vm780_vm1 }
   0xa   : > { %v1077_v15 = vld [vmem:[%s1310_s4 + $0x30] sm:$0xff] (!%p243_p2)   ;;  %v1079_v17 = vld [vmem:[%s1310_s4 + $0x38] sm:$0xff] (!%p243_p2)  }
   0xb   : > { %947 = vmatpush3.bf16.msra.mxu0 (!%p243_p2), %v1173_v3  ;;  %975 = vmatpush3.bf16.msra.mxu1 (!%p243_p2), %v1173_v3 }
   0xc   : > { %948 = vmatprep.subr.bf16.mxu0 (!%p243_p2), %v1180_v4  ;;  %976 = vmatprep.subr.bf16.mxu1 (!%p243_p2), %v1180_v4 }
   0xd   : > { %s1314_s22 = smov (!%p287_p3, %s876_s22), 1 }
   0xe   : > { %s930_s15 = sshll.u32 %s1314_s22, 5  ;;  %s934_s26 = sshll.u32 %s1314_s22, 4 }
   0xf   : > { %949 = vmatpush3.bf16.msra.mxu0 %v1187_v5  ;;  %977 = vmatpush3.bf16.msra.mxu1 %v1187_v5  ;;  %s1216_s20 = scalar_lea.vmem %s1306_s0, %s930_s15  ;;  %s1228_s27 = scalar_lea.vmem %s1307_s1, %s930_s15 }
  0x10   : > { %950 = vmatprep.subr.bf16.mxu0 %v1196_v6  ;;  %978 = vmatprep.subr.bf16.mxu1 %v1196_v6  ;;  %v1082_v11 = vld [vmem:[%s1216_s20 + $0x4] ss:$8 sps:$4 sm:$0xff]   ;;  %s1245_s10 = scalar_lea.vmem %s1308_s2, %s930_s15  ;;  %s1253_s16 = scalar_lea.vmem %s1309_s3, %s930_s15  ;;  %v1080_v18 = vld [vmem:[%s1216_s20] ss:$8 sps:$4 sm:$0xff]  }
  0x11   : > { %v1085_v12 = vld [vmem:[%s1228_s27 + $0x4] ss:$8 sps:$4 sm:$0xff]   ;;  %498 = vmatprep.mubr.bf16.mxu0 %v1082_v11  ;;  %v1083_v19 = vld [vmem:[%s1228_s27] ss:$8 sps:$4 sm:$0xff]   ;;  %s311_s29 = scalar_lea.vmem %s1312_s6, %s934_s26 }
  0x12   : > { %571 = vmatprep.mubr.bf16.mxu1 %v1085_v12  ;;  %v1086_v20 = vld [vmem:[%s1216_s20 + $0x14] ss:$8 sps:$4 sm:$0x1f]   ;;  %v1090_v22 = vld [vmem:[%s1216_s20 + $0x10] ss:$8 sps:$4 sm:$0x1f]  }
  0x13   : > { %951 = vmatpush3.bf16.msra.mxu0 %v1203_v7  ;;  %979 = vmatpush3.bf16.msra.mxu1 %v1203_v7  ;;  %v1088_v21 = vld [vmem:[%s1228_s27 + $0x14] ss:$8 sps:$4 sm:$0x1f]   ;;  %v1091_v23 = vld [vmem:[%s1228_s27 + $0x10] ss:$8 sps:$4 sm:$0x1f]  }
  0x14   : > { %952 = vmatprep.subr.bf16.mxu0 %v1211_v8  ;;  %980 = vmatprep.subr.bf16.mxu1 %v1211_v8  ;;  %v1094_v24 = vld [vmem:[%s1245_s10 + $0x4] ss:$8 sps:$4 sm:$0xff]   ;;  %v1092_v26 = vld [vmem:[%s1245_s10] ss:$8 sps:$4 sm:$0xff]  }
  0x15   : > { %v1097_v25 = vld [vmem:[%s1253_s16 + $0x4] ss:$8 sps:$4 sm:$0xff]   ;;  %v1095_v27 = vld [vmem:[%s1253_s16] ss:$8 sps:$4 sm:$0xff]  }
  0x16   : > { %v1098_v28 = vld [vmem:[%s1245_s10 + $0x14] ss:$8 sps:$4 sm:$0x1f]   ;;  %v1102_v30 = vld [vmem:[%s1245_s10 + $0x10] ss:$8 sps:$4 sm:$0x1f]  }
  0x17   : > { %953 = vmatpush3.bf16.msra.mxu0 %v1223_v9  ;;  %981 = vmatpush3.bf16.msra.mxu1 %v1223_v9  ;;  %v1100_v29 = vld [vmem:[%s1253_s16 + $0x14] ss:$8 sps:$4 sm:$0x1f]   ;;  %v1103_v31 = vld [vmem:[%s1253_s16 + $0x10] ss:$8 sps:$4 sm:$0x1f]  }
  0x18   : > { %954 = vmatprep.subr.bf16.mxu0 %v1074_v10  ;;  %982 = vmatprep.subr.bf16.mxu1 %v1074_v10 }
  0x1b   : > { %955 = vmatpush3.bf16.msra.mxu0 %v1075_v13  ;;  %983 = vmatpush3.bf16.msra.mxu1 %v1075_v13 }
  0x1c   : > { %956 = vmatprep.subr.bf16.mxu0 %v1076_v14  ;;  %984 = vmatprep.subr.bf16.mxu1 %v1076_v14 }
  0x1f   : > { %957 = vmatpush3.bf16.msra.mxu0 %v1077_v15  ;;  %985 = vmatpush3.bf16.msra.mxu1 %v1077_v15 }
  0x20   : > { %958 = vmatprep.subr.bf16.mxu0 %v1078_v16  ;;  %986 = vmatprep.subr.bf16.mxu1 %v1078_v16 }
  0x23   : > { %959 = vmatpush3.bf16.msra.mxu0 %v1079_v17  ;;  %987 = vmatpush3.bf16.msra.mxu1 %v1079_v17 }
  0x24   : > { %1000 = vmatprep.subr.bf16.mxu0 %v1064_v0  ;;  %1028 = vmatprep.subr.bf16.mxu1 %v1064_v0 }
  0x26   : > { %499 = vmatmul.mubr.bf16.vlgmr.msra.gmra.mrb[0].mxu0 %v1080_v18  ;;  %572 = vmatmul.mubr.bf16.vlgmr.msra.gmra.mrb[0].mxu1 %v1083_v19 }
  0x27   : > { %1001 = vmatpush3.bf16.msra.mxu0 %v1161_v1  ;;  %1029 = vmatpush3.bf16.msra.mxu1 %v1161_v1 }
  0x28   : > { %1002 = vmatprep.subr.bf16.mxu0 %v1166_v2  ;;  %1030 = vmatprep.subr.bf16.mxu1 %v1166_v2 }
  0x29   : > { %506 = vmatprep.mubr.bf16.mxu0 %v1086_v20  ;;  %579 = vmatprep.mubr.bf16.mxu1 %v1088_v21 }
  0x2b   : > { %1003 = vmatpush3.bf16.msra.mxu0 %v1173_v3  ;;  %1031 = vmatpush3.bf16.msra.mxu1 %v1173_v3 }
  0x2c   : > { %1004 = vmatprep.subr.bf16.mxu0 %v1180_v4  ;;  %1032 = vmatprep.subr.bf16.mxu1 %v1180_v4 }
  0x2e   : > { %507 = vmatmul.mubr.bf16.gmra.mrb[4].mxu0 %v1090_v22  ;;  %580 = vmatmul.mubr.bf16.gmra.mrb[4].mxu1 %v1091_v23 }
  0x2f   : > { %1005 = vmatpush3.bf16.msra.mxu0 %v1187_v5  ;;  %1033 = vmatpush3.bf16.msra.mxu1 %v1187_v5 }
  0x30   : > { %1006 = vmatprep.subr.bf16.mxu0 %v1196_v6  ;;  %1034 = vmatprep.subr.bf16.mxu1 %v1196_v6 }
  0x31   : > { %648 = vmatprep.mubr.bf16.mxu0 %v1094_v24  ;;  %725 = vmatprep.mubr.bf16.mxu1 %v1097_v25 }
  0x33   : > { %1007 = vmatpush3.bf16.msra.mxu0 %v1203_v7  ;;  %1035 = vmatpush3.bf16.msra.mxu1 %v1203_v7 }
  0x34   : > { %1008 = vmatprep.subr.bf16.mxu0 %v1211_v8  ;;  %1036 = vmatprep.subr.bf16.mxu1 %v1211_v8 }
  0x37   : > { %1009 = vmatpush3.bf16.msra.mxu0 %v1223_v9  ;;  %1037 = vmatpush3.bf16.msra.mxu1 %v1223_v9  ;;  %v923_v9 = vld [vmem:[%s1311_s5] ss:$0 sm:$0xff] }
  0x38   : > { %1010 = vmatprep.subr.bf16.mxu0 %v1074_v10  ;;  %1038 = vmatprep.subr.bf16.mxu1 %v1074_v10 }
  0x3b   : > { %1011 = vmatpush3.bf16.msra.mxu0 %v1075_v13  ;;  %1039 = vmatpush3.bf16.msra.mxu1 %v1075_v13 }
  0x3c   : > { %1012 = vmatprep.subr.bf16.mxu0 %v1076_v14  ;;  %1040 = vmatprep.subr.bf16.mxu1 %v1076_v14 }
  0x3f   : > { %1013 = vmatpush3.bf16.msra.mxu0 %v1077_v15  ;;  %1041 = vmatpush3.bf16.msra.mxu1 %v1077_v15 }
  0x40   : > { %1014 = vmatprep.subr.bf16.mxu0 %v1078_v16  ;;  %1042 = vmatprep.subr.bf16.mxu1 %v1078_v16 }
  0x43   : > { %1015 = vmatpush3.bf16.msra.mxu0 %v1079_v17  ;;  %1043 = vmatpush3.bf16.msra.mxu1 %v1079_v17 }
  0x46   : > { %649 = vmatmul.mubr.bf16.vlgmr.msra.gmra.mrb[8].mxu0 %v1092_v26  ;;  %726 = vmatmul.mubr.bf16.vlgmr.msra.gmra.mrb[8].mxu1 %v1095_v27 }
  0x47   : > { %656 = vmatprep.mubr.bf16.mxu0 %v1098_v28  ;;  %733 = vmatprep.mubr.bf16.mxu1 %v1100_v29 }
  0x4e   : > { %657 = vmatmul.mubr.bf16.gmra.mrb[12].mxu0 %v1102_v30  ;;  %734 = vmatmul.mubr.bf16.gmra.mrb[12].mxu1 %v1103_v31 }
  0xf9   : > { %v960_v32 = vpop.f32.mrb[0].mxu0  ;;  %v988_v33 = vpop.f32.mrb[0].mxu1 }
  0xfa   : > { %v961_v34 = vpop.f32.mrb[1].mxu0  ;;  %v989_v35 = vpop.f32.mrb[1].mxu1 }
  0xfb   : > { %v962_v36 = vadd.f32 %v961_v34, %v960_v32  ;;  %v990_v37 = vadd.f32 %v989_v35, %v988_v33  ;;  %v963_v38 = vpop.f32.mrb[2].mxu0  ;;  %v991_v39 = vpop.f32.mrb[2].mxu1 }
  0xfc   : > { %v964_v40 = vpop.f32.mrb[3].mxu0  ;;  %v992_v41 = vpop.f32.mrb[3].mxu1 }
  0xfd   : > { %v588_v42 = vmax.f32 %v962_v36, %v990_v37  ;;  %v965_v43 = vadd.f32 %v964_v40, %v963_v38  ;;  %v993_v44 = vadd.f32 %v992_v41, %v991_v39  ;;  %v782_v39 = vld [vmem:[%s311_s29 + $0xc] sm:$0x1] }
  0xff   : > { %v589_v45 = vmax.f32 %v965_v43, %v993_v44 }
 0x101   : > { %v966_v46 = vpop.f32.mrb[4].mxu0  ;;  %v994_v47 = vpop.f32.mrb[4].mxu1 }
 0x102   : > { %v967_v48 = vpop.f32.mrb[5].mxu0  ;;  %v995_v49 = vpop.f32.mrb[5].mxu1 }
 0x103   : > { %v968_v50 = vadd.f32 %v967_v48, %v966_v46  ;;  %v996_v51 = vadd.f32 %v995_v49, %v994_v47  ;;  %v969_v52 = vpop.f32.mrb[6].mxu0  ;;  %v997_v53 = vpop.f32.mrb[6].mxu1 }
 0x104   : > { %v970_v54 = vpop.f32.mrb[7].mxu0  ;;  %v998_v55 = vpop.f32.mrb[7].mxu1 }
 0x105   : > { %v590_v56 = vmax.f32 %v968_v50, %v996_v51  ;;  %v971_v57 = vadd.f32 %v970_v54, %v969_v52  ;;  %v999_v58 = vadd.f32 %v998_v55, %v997_v53 }
 0x107   : > { %v591_v59 = vmax.f32 %v971_v57, %v999_v58 }
 0x119   : > { %v1016_v60 = vpop.f32.mrb[8].mxu0  ;;  %v1044_v61 = vpop.f32.mrb[8].mxu1 }
 0x11a   : > { %v1017_v62 = vpop.f32.mrb[9].mxu0  ;;  %v1045_v63 = vpop.f32.mrb[9].mxu1 }
 0x11b   : > { %v1018_v0 = vadd.f32 %v1017_v62, %v1016_v60  ;;  %v1046_v1 = vadd.f32 %v1045_v63, %v1044_v61  ;;  %v1019_v2 = vpop.f32.mrb[10].mxu0  ;;  %v1047_v3 = vpop.f32.mrb[10].mxu1 }
 0x11c   : > { %v1020_v4 = vpop.f32.mrb[11].mxu0  ;;  %v1048_v5 = vpop.f32.mrb[11].mxu1 }
 0x11d   : > { %v665_v6 = vmax.f32 %v588_v42, %v1018_v0  ;;  %v1021_v7 = vadd.f32 %v1020_v4, %v1019_v2  ;;  %v1049_v8 = vadd.f32 %v1048_v5, %v1047_v3 }
 0x11f   : > { %v742_v10 = vmax.f32 %v665_v6, %v1046_v1  ;;  %v666_v11 = vmax.f32 %v589_v45, %v1021_v7 }
 0x121   : > { %v752_v12 = vadd.f32 %v923_v9, %v742_v10  ;;  %v743_v13 = vmax.f32 %v666_v11, %v1049_v8  ;;  %v1022_v14 = vpop.f32.mrb[12].mxu0  ;;  %v1050_v15 = vpop.f32.mrb[12].mxu1 }
 0x122   : > { %v1023_v16 = vpop.f32.mrb[13].mxu0  ;;  %v1051_v17 = vpop.f32.mrb[13].mxu1 }
 0x123   : > { %v753_v18 = vadd.f32 %v923_v9, %v743_v13  ;;  %v1024_v19 = vadd.f32 %v1023_v16, %v1022_v14  ;;  %v1052_v20 = vadd.f32 %v1051_v17, %v1050_v15  ;;  %v1025_v21 = vpop.f32.mrb[14].mxu0  ;;  %v1053_v22 = vpop.f32.mrb[14].mxu1  ;;  %v756_v23 = vmax.f32 %v752_v12, 0.0 }
 0x124   : > { %v1026_v24 = vpop.f32.mrb[15].mxu0  ;;  %v1054_v25 = vpop.f32.mrb[15].mxu1 }
 0x125   : > { %v757_v26 = vmax.f32 %v753_v18, 0.0  ;;  %v667_v27 = vmax.f32 %v590_v56, %v1024_v19  ;;  %v1027_v28 = vadd.f32 %v1026_v24, %v1025_v21  ;;  %v1055_v29 = vadd.f32 %v1054_v25, %v1053_v22 }
 0x127   : > { %v942_v30 = vpack.c.bf16 %v757_v26, %v756_v23  ;;  %v744_v31 = vmax.f32 %v667_v27, %v1052_v20  ;;  %v668_v32 = vmax.f32 %v591_v59, %v1027_v28 }
 0x129   : > { %943 = vst [vmem:[%s311_s29] sm:$0xff] %v942_v30   ;;  %v754_v33 = vadd.f32 %v923_v9, %v744_v31  ;;  %v745_v34 = vmax.f32 %v668_v32, %v1055_v29 }
 0x12b   : > { %v758_v35 = vmax.f32 %v754_v33, 0.0  ;;  %v755_v36 = vadd.f32 %v923_v9, %v745_v34 }
 0x12d   : > { %v937_v37 = vpack.c.bf16 %v758_v35, %v758_v35  ;;  %v759_v38 = vmax.f32 %v755_v36, 0.0 }
 0x12f   : > { %778 = vst [vmem:[%s311_s29 + $0x8] sm:$0xf] %v937_v37  ;;  %v938_v40 = vpack.c.bf16 %v759_v38, %v759_v38 }
 0x131   : > { %v783_v41 = vsel %vm781_vm2, %v938_v40, %v782_v39 }
 0x132   : > { %784 = vst [vmem:[%s311_s29 + $0xc] sm:$0x1] %v783_v41 }
 0x133 PF: > { %s16_s21 = sadd.s32 1, %s1110_s21  }
 0x134   : > { %p13_p4 = scmp.ge.s32.totalorder %s16_s21, 4  }
 0x136   :  { %15 = sbr.rel (!%p13_p4) target bundleno = 1 (0x1), region = 83 }

// kernel: cnn_cifar_forward.5
= control target key start
LH: loop header
LB: loop body
LE: loop exit
PB: predicated region body
PF: predicated region fallthrough
CT: control target
= control target key end

     0   :  { %v845_v34 = vmov 0.0   ;;  %vm846_vm0 = vmmov 0   ;;  %s1076_s1 = inlined_call_operand.vmem [shape: bf16[512,128], index: 1, kind: input, shape index: {}]   ;;  %s1077_s0 = inlined_call_operand.vmem [shape: bf16[16,512], index: 0, kind: input, shape index: {}]   ;;  %s1078_s3 = inlined_call_operand.vmem [shape: bf16[128,128], index: 3, kind: input, shape index: {}]   ;;  %s1079_s5 = inlined_call_operand.vmem [shape: bf16[128,128], index: 5, kind: input, shape index: {}]   ;;  %s1080_s2 = inlined_call_operand.vmem [shape: f32[1,128], index: 2, kind: input, shape index: {}]   ;;  %s1081_s4 = inlined_call_operand.vmem [shape: f32[1,128], index: 4, kind: input, shape index: {}]   ;;  %s1082_s6 = inlined_call_operand.vmem [shape: f32[1,128], index: 6, kind: input, shape index: {}]   ;;  %s1083_s7 = inlined_call_operand.vmem [shape: f32[16,128], index: 7, kind: output, shape index: {}]  }
   0x1   :  { %v791_v0 = vld [vmem:[%s1076_s1 + $0x40] sm:$0xff]   ;;  %v795_v4 = vld [vmem:[%s1076_s1 + $0x48] sm:$0xff]   ;;  %v799_v8 = vld [vmem:[%s1076_s1 + $0x50] sm:$0xff]  }
   0x2   :  { %v792_v1 = vld [vmem:[%s1076_s1 + $0xc0] sm:$0xff]   ;;  %687 = vmatprep.subr.bf16.mxu0 %v791_v0  ;;  %v796_v5 = vld [vmem:[%s1076_s1 + $0xc8] sm:$0xff]   ;;  %v800_v9 = vld [vmem:[%s1076_s1 + $0xd0] sm:$0xff]  }
   0x3   :  { %v793_v2 = vld [vmem:[%s1076_s1] sm:$0xff]   ;;  %709 = vmatprep.subr.bf16.mxu1 %v792_v1  ;;  %v797_v6 = vld [vmem:[%s1076_s1 + $0x8] sm:$0xff]   ;;  %v801_v10 = vld [vmem:[%s1076_s1 + $0x10] sm:$0xff]  }
   0x4   :  { %v794_v3 = vld [vmem:[%s1076_s1 + $0x80] sm:$0xff]   ;;  %688 = vmatpush3.bf16.msra.mxu0 %v793_v2  ;;  %v798_v7 = vld [vmem:[%s1076_s1 + $0x88] sm:$0xff]   ;;  %v802_v11 = vld [vmem:[%s1076_s1 + $0x90] sm:$0xff]  }
   0x5   :  { %710 = vmatpush3.bf16.msra.mxu1 %v794_v3  ;;  %689 = vmatprep.subr.bf16.mxu0 %v795_v4  ;;  %v803_v12 = vld [vmem:[%s1076_s1 + $0x58] sm:$0xff]   ;;  %v807_v16 = vld [vmem:[%s1076_s1 + $0x60] sm:$0xff]   ;;  %v811_v20 = vld [vmem:[%s1076_s1 + $0x68] sm:$0xff]  }
   0x6   :  { %711 = vmatprep.subr.bf16.mxu1 %v796_v5  ;;  %v804_v13 = vld [vmem:[%s1076_s1 + $0xd8] sm:$0xff]   ;;  %v808_v17 = vld [vmem:[%s1076_s1 + $0xe0] sm:$0xff]   ;;  %v812_v21 = vld [vmem:[%s1076_s1 + $0xe8] sm:$0xff]  }
   0x7   :  { %v805_v14 = vld [vmem:[%s1076_s1 + $0x18] sm:$0xff]   ;;  %v809_v18 = vld [vmem:[%s1076_s1 + $0x20] sm:$0xff]   ;;  %v813_v22 = vld [vmem:[%s1076_s1 + $0x28] sm:$0xff]  }
   0x8   :  { %690 = vmatpush3.bf16.msra.mxu0 %v797_v6  ;;  %v806_v15 = vld [vmem:[%s1076_s1 + $0x98] sm:$0xff]   ;;  %v810_v19 = vld [vmem:[%s1076_s1 + $0xa0] sm:$0xff]   ;;  %v814_v23 = vld [vmem:[%s1076_s1 + $0xa8] sm:$0xff]  }
   0x9   :  { %712 = vmatpush3.bf16.msra.mxu1 %v798_v7  ;;  %691 = vmatprep.subr.bf16.mxu0 %v799_v8  ;;  %v815_v24 = vld [vmem:[%s1076_s1 + $0x70] sm:$0xff]   ;;  %v819_v28 = vld [vmem:[%s1076_s1 + $0x78] sm:$0xff]   ;;  %v829_v37 = vld [vmem:[%s1078_s3] sm:$0xff]  }
   0xa   :  { %713 = vmatprep.subr.bf16.mxu1 %v800_v9  ;;  %v816_v25 = vld [vmem:[%s1076_s1 + $0xf0] sm:$0xff]   ;;  %v820_v29 = vld [vmem:[%s1076_s1 + $0xf8] sm:$0xff]   ;;  %v830_v38 = vld [vmem:[%s1078_s3 + $0x8] sm:$0xff]  }
   0xb   :  { %v817_v26 = vld [vmem:[%s1076_s1 + $0x30] sm:$0xff]   ;;  %v821_v30 = vld [vmem:[%s1076_s1 + $0x38] sm:$0xff]   ;;  %v833_v41 = vld [vmem:[%s1078_s3 + $0x20] sm:$0xff]  }
   0xc   :  { %692 = vmatpush3.bf16.msra.mxu0 %v801_v10  ;;  %v818_v27 = vld [vmem:[%s1076_s1 + $0xb0] sm:$0xff]   ;;  %v822_v31 = vld [vmem:[%s1076_s1 + $0xb8] sm:$0xff]   ;;  %v834_v42 = vld [vmem:[%s1078_s3 + $0x28] sm:$0xff]  }
   0xd   :  { %714 = vmatpush3.bf16.msra.mxu1 %v802_v11  ;;  %693 = vmatprep.subr.bf16.mxu0 %v803_v12  ;;  %v823_v32 = vld [vmem:[%s1077_s0] ss:$16 sps:$4 sm:$0xff]   ;;  %v825_v33 = vld [vmem:[%s1077_s0 + $0x4] ss:$16 sps:$4 sm:$0xff]   ;;  %v826_v35 = vld [vmem:[%s1077_s0 + $0x8] ss:$16 sps:$4 sm:$0xff]  }
   0xe   :  { %715 = vmatprep.subr.bf16.mxu1 %v804_v13  ;;  %v828_v36 = vld [vmem:[%s1077_s0 + $0xc] ss:$16 sps:$4 sm:$0xff]   ;;  %346 = vmatprep.mubr.bf16.mxu0 %v825_v33  ;;  %v831_v39 = vld [vmem:[%s1078_s3 + $0x10] sm:$0xff]   ;;  %v837_v45 = vld [vmem:[%s1079_s5] sm:$0xff]  }
   0xf   :  { %387 = vmatprep.mubr.bf16.mxu1 %v828_v36  ;;  %v832_v40 = vld [vmem:[%s1078_s3 + $0x18] sm:$0xff]   ;;  %v835_v43 = vld [vmem:[%s1078_s3 + $0x30] sm:$0xff]   ;;  %v838_v46 = vld [vmem:[%s1079_s5 + $0x8] sm:$0xff]  }
  0x10   :  { %694 = vmatpush3.bf16.msra.mxu0 %v805_v14  ;;  %v836_v44 = vld [vmem:[%s1078_s3 + $0x38] sm:$0xff]   ;;  %v839_v47 = vld [vmem:[%s1079_s5 + $0x10] sm:$0xff]   ;;  %v841_v49 = vld [vmem:[%s1079_s5 + $0x20] sm:$0xff]  }
  0x11   :  { %716 = vmatpush3.bf16.msra.mxu1 %v806_v15  ;;  %695 = vmatprep.subr.bf16.mxu0 %v807_v16  ;;  %v840_v48 = vld [vmem:[%s1079_s5 + $0x18] sm:$0xff]   ;;  %v842_v50 = vld [vmem:[%s1079_s5 + $0x28] sm:$0xff]   ;;  %v632_v53 = vld [vmem:[%s1080_s2] ss:$0 sm:$0xff] }
  0x12   :  { %717 = vmatprep.subr.bf16.mxu1 %v808_v17  ;;  %v843_v7 = vld [vmem:[%s1079_s5 + $0x30] sm:$0xff]   ;;  %v844_v8 = vld [vmem:[%s1079_s5 + $0x38] sm:$0xff]   ;;  %v669_v9 = vld [vmem:[%s1081_s4] ss:$0 sm:$0xff] }
  0x14   :  { %696 = vmatpush3.bf16.msra.mxu0 %v809_v18 }
  0x15   :  { %718 = vmatpush3.bf16.msra.mxu1 %v810_v19  ;;  %697 = vmatprep.subr.bf16.mxu0 %v811_v20  ;;  %v678_v19 = vld [vmem:[%s1082_s6] ss:$0 sm:$0xff] }
  0x16   :  { %719 = vmatprep.subr.bf16.mxu1 %v812_v21 }
  0x18   :  { %698 = vmatpush3.bf16.msra.mxu0 %v813_v22 }
  0x19   :  { %720 = vmatpush3.bf16.msra.mxu1 %v814_v23  ;;  %699 = vmatprep.subr.bf16.mxu0 %v815_v24 }
  0x1a   :  { %721 = vmatprep.subr.bf16.mxu1 %v816_v25 }
  0x1c   :  { %700 = vmatpush3.bf16.msra.mxu0 %v817_v26 }
  0x1d   :  { %722 = vmatpush3.bf16.msra.mxu1 %v818_v27  ;;  %701 = vmatprep.subr.bf16.mxu0 %v819_v28 }
  0x1e   :  { %723 = vmatprep.subr.bf16.mxu1 %v820_v29 }
  0x20   :  { %702 = vmatpush3.bf16.msra.mxu0 %v821_v30 }
  0x21   :  { %724 = vmatpush3.bf16.msra.mxu1 %v822_v31  ;;  %749 = vmatprep.subr.bf16.mxu0 %v845_v34 }
  0x22   :  { %769 = vmatprep.subr.bf16.mxu1 %v845_v34 }
  0x23   :  { %347 = vmatmul.mubr.bf16.vlgmr.msra.gmra.mrb[0].mxu0 %v823_v32 }
  0x24   :  { %388 = vmatmul.mubr.bf16.vlgmr.msra.gmra.mrb[0].mxu1 %v826_v35  ;;  %750 = vmatpush3.bf16.msra.mxu0 %v829_v37 }
  0x25   :  { %751 = vmatprep.subr.bf16.mxu0 %v845_v34  ;;  %765 = vmatprep.mubr.msk.bf16.mxu0 %vm846_vm0, %v845_v34 }
  0x26   :  { %785 = vmatprep.mubr.msk.bf16.mxu1 %vm846_vm0, %v845_v34  ;;  %770 = vmatpush3.bf16.msra.mxu1 %v837_v45 }
  0x27   :  { %771 = vmatprep.subr.bf16.mxu1 %v845_v34 }
  0x28   :  { %752 = vmatpush3.bf16.msra.mxu0 %v830_v38 }
  0x29   :  { %753 = vmatprep.subr.bf16.mxu0 %v845_v34 }
  0x2a   :  { %772 = vmatpush3.bf16.msra.mxu1 %v838_v46 }
  0x2b   :  { %773 = vmatprep.subr.bf16.mxu1 %v845_v34 }
  0x2c   :  { %754 = vmatpush3.bf16.msra.mxu0 %v831_v39 }
  0x2d   :  { %755 = vmatprep.subr.bf16.mxu0 %v845_v34 }
  0x2e   :  { %774 = vmatpush3.bf16.msra.mxu1 %v839_v47 }
  0x2f   :  { %775 = vmatprep.subr.bf16.mxu1 %v845_v34 }
  0x30   :  { %756 = vmatpush3.bf16.msra.mxu0 %v832_v40 }
  0x31   :  { %757 = vmatprep.subr.bf16.mxu0 %v845_v34 }
  0x32   :  { %776 = vmatpush3.bf16.msra.mxu1 %v840_v48 }
  0x33   :  { %777 = vmatprep.subr.bf16.mxu1 %v845_v34 }
  0x34   :  { %758 = vmatpush3.bf16.msra.mxu0 %v833_v41 }
  0x35   :  { %759 = vmatprep.subr.bf16.mxu0 %v845_v34 }
  0x36   :  { %778 = vmatpush3.bf16.msra.mxu1 %v841_v49 }
  0x37   :  { %779 = vmatprep.subr.bf16.mxu1 %v845_v34 }
  0x38   :  { %760 = vmatpush3.bf16.msra.mxu0 %v834_v42 }
  0x39   :  { %761 = vmatprep.subr.bf16.mxu0 %v845_v34 }
  0x3a   :  { %780 = vmatpush3.bf16.msra.mxu1 %v842_v50 }
  0x3b   :  { %781 = vmatprep.subr.bf16.mxu1 %v845_v34 }
  0x3c   :  { %762 = vmatpush3.bf16.msra.mxu0 %v835_v43 }
  0x3d   :  { %763 = vmatprep.subr.bf16.mxu0 %v845_v34 }
  0x3e   :  { %782 = vmatpush3.bf16.msra.mxu1 %v843_v7 }
  0x3f   :  { %783 = vmatprep.subr.bf16.mxu1 %v845_v34 }
  0x40   :  { %764 = vmatpush3.bf16.msra.mxu0 %v836_v44 }
  0x42   :  { %784 = vmatpush3.bf16.msra.mxu1 %v844_v8 }
  0xf6   :  { %v703_v51 = vpop.f32.mrb[0].mxu0 }
  0xf7   :  { %v725_v52 = vpop.f32.mrb[0].mxu1  ;;  %v704_v54 = vpop.f32.mrb[1].mxu0 }
  0xf8   :  { %v705_v55 = vadd.f32 %v704_v54, %v703_v51  ;;  %v726_v56 = vpop.f32.mrb[1].mxu1  ;;  %v706_v57 = vpop.f32.mrb[2].mxu0 }
  0xf9   :  { %v727_v58 = vadd.f32 %v726_v56, %v725_v52  ;;  %v728_v59 = vpop.f32.mrb[2].mxu1  ;;  %v707_v60 = vpop.f32.mrb[3].mxu0 }
  0xfa   :  { %v349_v61 = vadd.f32 %v705_v55, %v632_v53  ;;  %v708_v62 = vadd.f32 %v707_v60, %v706_v57  ;;  %v729_v63 = vpop.f32.mrb[3].mxu1 }
  0xfb   :  { %v730_v0 = vadd.f32 %v729_v63, %v728_v59 }
  0xfc   :  { %v390_v1 = vadd.f32 %v727_v58, %v349_v61  ;;  %v352_v2 = vadd.f32 %v708_v62, %v632_v53 }
  0xfe   :  { %v393_v3 = vadd.f32 %v730_v0, %v352_v2  ;;  %v396_v4 = vmax.f32 %v390_v1, 0.0 }
 0x100   :  { %v397_v5 = vmax.f32 %v393_v3, 0.0 }
 0x102   :  { %v398_v6 = vpack.c.bf16 %v397_v5, %v396_v4 }
 0x104   :  { %766 = vmatmul.mubr.bf16.vlgmr.msra.gmra.mrb[4].mxu0 %v398_v6 }
 0x1d7   :  { %v504_v10 = vpop.f32.mrb[4].mxu0 }
 0x1d8   :  { %v505_v11 = vadd.f32 %v669_v9, %v504_v10  ;;  %v767_v12 = vpop.f32.mrb[5].mxu0 }
 0x1d9   :  { %v507_v13 = vpop.f32.mrb[6].mxu0 }
 0x1da   :  { %v508_v14 = vadd.f32 %v669_v9, %v507_v13  ;;  %v768_v15 = vpop.f32.mrb[7].mxu0  ;;  %v511_v16 = vmax.f32 %v505_v11, 0.0 }
 0x1dc   :  { %v512_v17 = vmax.f32 %v508_v14, 0.0 }
 0x1de   :  { %v513_v18 = vpack.c.bf16 %v512_v17, %v511_v16 }
 0x1e0   :  { %786 = vmatmul.mubr.bf16.vlgmr.msra.gmra.mrb[4].mxu1 %v513_v18 }
 0x2b3   :  { %v619_v20 = vpop.f32.mrb[4].mxu1 }
 0x2b4   :  { %v620_v21 = vadd.f32 %v678_v19, %v619_v20  ;;  %v787_v22 = vpop.f32.mrb[5].mxu1 }
 0x2b5   :  { %v622_v23 = vpop.f32.mrb[6].mxu1 }
 0x2b6   :  { %626 = vst [vmem:[%s1083_s7] sm:$0xff] %v620_v21  ;;  %v623_v24 = vadd.f32 %v678_v19, %v622_v23  ;;  %v788_v25 = vpop.f32.mrb[7].mxu1 }
 0x2b8   :  { %627 = vst [vmem:[%s1083_s7 + $0x8] sm:$0xff] %v623_v24 }

</bundles_post_ra>
